<compile_context>
chip_gen: v7x
topology: tpu7x:2x2x1
jax: 0.10.0
libtpu: 0.0.40
codegen_flags: <defaults>
</compile_context>

<pallas_src>
import functools
import math

import jax
import jax.numpy as jnp
from jax.experimental import pallas as pl
from jax.experimental.pallas import tpu as pltpu


def transformer_block_kernel(
    x_ref,        # (Bb, S, E)  input block (x.dtype)
    w_in_ref,     # (E, 3E)     bf16, in_proj_weight.T with 1/sqrt(d) folded into Q cols
    b_in_ref,     # (1, 3E)     f32, in_proj_bias with 1/sqrt(d) folded into Q part
    w_out_ref,    # (E, E)      bf16, out_proj.weight.T
    b_out_ref,    # (1, E)      f32
    g1_ref,       # (1, E)      f32, layer_norm1 weight
    beta1_ref,    # (1, E)      f32, layer_norm1 bias
    w1_ref,       # (E, E)      bf16, ff[0].weight.T
    b1_ref,       # (1, E)      f32
    w2_ref,       # (E, E)      bf16, ff[2].weight.T
    b2_ref,       # (1, E)      f32
    g2_ref,       # (1, E)      f32, layer_norm2 weight
    beta2_ref,    # (1, E)      f32, layer_norm2 bias
    o_ref,        # (Bb, S, E)  output block
    *,
    num_heads: int,
    approx_recip: bool = True,
):
    Bb, S, E = x_ref.shape
    H = num_heads
    d = E // H
    M = Bb * S

    # Flatten batch*seq into the matmul M dimension (leading dims only; lane dim E
    # untouched). Keep the residual / LayerNorm path in f32.
    x32 = x_ref[...].astype(jnp.float32).reshape(M, E)
    xb = x32.astype(jnp.bfloat16)

    # ---- QKV projection: bf16 MXU operands, f32 accumulation, single bf16 cast ----
    qkv = jnp.dot(xb, w_in_ref[...], preferred_element_type=jnp.float32) + b_in_ref[...]
    qkv = qkv.astype(jnp.bfloat16)                       # (M, 3E) bf16, only live copy

    # ---- One up-front head-major relayout: (M, E) -> (Bb*H, S, d) -------------------
    def to_heads(t):
        return t.reshape(Bb, S, H, d).transpose(0, 2, 1, 3).reshape(Bb * H, S, d)

    q = to_heads(qkv[:, 0 * E:1 * E])                    # 1/sqrt(d) already folded in
    k = to_heads(qkv[:, 1 * E:2 * E])
    v = to_heads(qkv[:, 2 * E:3 * E])

    # ---- Attention: batched over (batch*head); contraction on last dim (no .T) ------
    s = jnp.einsum('bqd,bkd->bqk', q, k,
                   preferred_element_type=jnp.float32)   # (Bb*H, S, S) f32
    m = jnp.max(s, axis=-1, keepdims=True)
    p = jnp.exp(s - m)                                   # unnormalized probs
    r = jnp.sum(p, axis=-1, keepdims=True)               # (Bb*H, S, 1)

    o = jnp.einsum('bqk,bkd->bqd', p.astype(jnp.bfloat16), v,
                   preferred_element_type=jnp.float32)   # (Bb*H, S, d) f32
    # Normalize AFTER P@V (touches S*d, not S*S) with an EUP reciprocal.
    o = o * pl.reciprocal(r, approx=approx_recip)

    # Heads back to lane-concat layout (bf16 so the relayout moves half the bytes),
    # then a single full-depth (M, E) @ (E, E) out-projection.
    attn_in = (o.astype(jnp.bfloat16)
               .reshape(Bb, H, S, d).transpose(0, 2, 1, 3).reshape(M, E))
    attn = jnp.dot(attn_in, w_out_ref[...],
                   preferred_element_type=jnp.float32) + b_out_ref[...]   # (M, E) f32

    # ---- residual + LayerNorm1 (f32) -------------------------------------------------
    h1 = attn + x32
    mu1 = jnp.mean(h1, axis=-1, keepdims=True)
    var1 = jnp.mean((h1 - mu1) ** 2, axis=-1, keepdims=True)
    x1 = (h1 - mu1) * jax.lax.rsqrt(var1 + 1e-5) * g1_ref[...] + beta1_ref[...]

    # ---- FeedForward: Linear -> ReLU -> Linear (bf16 MXU, f32 accumulate) ------------
    f = jnp.dot(x1.astype(jnp.bfloat16), w1_ref[...],
                preferred_element_type=jnp.float32) + b1_ref[...]
    f = jnp.maximum(f, 0.0)
    f = jnp.dot(f.astype(jnp.bfloat16), w2_ref[...],
                preferred_element_type=jnp.float32) + b2_ref[...]

    # ---- residual + LayerNorm2 (f32) -------------------------------------------------
    h2 = f + x1
    mu2 = jnp.mean(h2, axis=-1, keepdims=True)
    var2 = jnp.mean((h2 - mu2) ** 2, axis=-1, keepdims=True)
    out = (h2 - mu2) * jax.lax.rsqrt(var2 + 1e-5) * g2_ref[...] + beta2_ref[...]

    o_ref[...] = out.reshape(Bb, S, E).astype(o_ref.dtype)


def _tpu_vmem_capacity_bytes():
    """Trace-time VMEM capacity; conservative (v7x-sized) fallback if unavailable."""
    try:
        return int(pltpu.get_tpu_info().vmem_capacity_bytes)
    except Exception:  # capability probe only — safe fallback
        return 64 * 1024 * 1024


def _vmem_limit_bytes(vmem_cap):
    mib = 1024 * 1024
    if vmem_cap >= 100 * mib:          # v5e / v6e (128 MiB physical)
        return 100 * mib
    # v7x-class (64 MiB physical): leave headroom for the compiler's own scratch.
    return max(min(vmem_cap - 8 * mib, 56 * mib), 32 * mib)


def _pick_batch_block(B, S, E, H, x_itemsize, weight_bytes, vmem_budget):
    """Largest divisor Bb of B whose per-step VMEM estimate fits, then keep >= 2 steps."""
    def est_bytes(Bb):
        M = Bb * S
        io = 2 * 2 * M * E * x_itemsize            # x + out blocks, double-buffered
        qkv = 2 * M * 3 * E                        # bf16 (M, 3E)
        heads = 3 * 2 * M * E                      # head-major q, k, v (bf16)
        scores = Bb * H * S * S * 6                # f32 scores + bf16 probs
        f32_tmp = 6 * 4 * M * E                    # attn out, residuals, LN, FF temps
        return weight_bytes + io + qkv + heads + scores + f32_tmp

    candidates = [c for c in range(1, B + 1) if B % c == 0]
    best = 1
    for c in candidates:
        if est_bytes(c) <= vmem_budget:
            best = c
    # Keep >= 2 grid steps when possible so dual-TensorCore chips (v7x) use both cores.
    if B >= 2:
        while B // best < 2:
            best = max(c for c in candidates if c < best)
    return best


def _prepare_weights(params, num_heads):
    """Cast MXU weights to bf16 and fold the 1/sqrt(d) scale into the Q slice."""
    E = params["w_out"].shape[0]
    d = E // num_heads
    scale = 1.0 / math.sqrt(d)
    q_scale = jnp.concatenate(
        [jnp.full((E,), scale, jnp.float32), jnp.ones((2 * E,), jnp.float32)])
    w_in = (params["w_in"].astype(jnp.float32) * q_scale[None, :]).astype(jnp.bfloat16)
    b_in = params["b_in"].astype(jnp.float32) * q_scale[None, :]
    return [
        w_in, b_in,
        params["w_out"].astype(jnp.bfloat16), params["b_out"].astype(jnp.float32),
        params["g1"].astype(jnp.float32), params["beta1"].astype(jnp.float32),
        params["w1"].astype(jnp.bfloat16), params["b1"].astype(jnp.float32),
        params["w2"].astype(jnp.bfloat16), params["b2"].astype(jnp.float32),
        params["g2"].astype(jnp.float32), params["beta2"].astype(jnp.float32),
    ]


def _transformer_block_impl(x, weights, num_heads, Bb, vmem_limit, *,
                            single_buffer_weights):
    B, S, E = x.shape
    nb = B // Bb

    def weight_spec(arr):
        nd = arr.ndim
        kwargs = {}
        if single_buffer_weights:
            # Weights never change across grid steps -> no double buffering needed.
            kwargs["pipeline_mode"] = pl.Buffered(1)
        return pl.BlockSpec(arr.shape, lambda i, _nd=nd: (0,) * _nd, **kwargs)

    x_spec = pl.BlockSpec((Bb, S, E), lambda i: (i, 0, 0))
    out_spec = pl.BlockSpec((Bb, S, E), lambda i: (i, 0, 0))

    return pl.pallas_call(
        functools.partial(transformer_block_kernel, num_heads=num_heads),
        out_shape=jax.ShapeDtypeStruct((B, S, E), x.dtype),
        grid=(nb,),
        in_specs=[x_spec] + [weight_spec(w) for w in weights],
        out_specs=out_spec,
        compiler_params=pltpu.CompilerParams(
            dimension_semantics=("parallel",),
            vmem_limit_bytes=int(vmem_limit),
        ),
    )(x, *weights)


def transformer_block(x, params, num_heads):
    B, S, E = x.shape
    assert E % num_heads == 0, "hidden_size must be divisible by num_heads"
    weights = _prepare_weights(params, num_heads)

    vmem_cap = _tpu_vmem_capacity_bytes()
    vmem_limit = _vmem_limit_bytes(vmem_cap)
    # Budget weights at 2x (worst case: double-buffered if Buffered(1) is unavailable).
    weight_bytes = 2 * sum(int(w.size) * w.dtype.itemsize for w in weights)
    Bb = _pick_batch_block(B, S, E, num_heads, x.dtype.itemsize, weight_bytes, vmem_limit)

    try:
        return _transformer_block_impl(x, weights, num_heads, Bb, vmem_limit,
                                       single_buffer_weights=True)
    except (TypeError, ValueError, NotImplementedError, pltpu.LoweringException):
        # Narrow fallback: only if this JAX build rejects pipeline_mode / Buffered(1).
        return _transformer_block_impl(x, weights, num_heads, Bb, vmem_limit,
                                       single_buffer_weights=False)


def _reference(x, p, num_heads):
    """Pure-JAX f32 reference with identical (eval-mode, no-dropout) semantics."""
    B, S, E = x.shape
    d = E // num_heads
    qkv = x @ p["w_in"] + p["b_in"]
    q, k, v = qkv[..., :E], qkv[..., E:2 * E], qkv[..., 2 * E:]

    def split(t):  # (B,S,E) -> (B,H,S,d)
        return t.reshape(B, S, num_heads, d).transpose(0, 2, 1, 3)

    qh, kh, vh = split(q), split(k), split(v)
    s = jnp.einsum("bhqd,bhkd->bhqk", qh, kh) / (d ** 0.5)
    p_attn = jax.nn.softmax(s, axis=-1)
    o = jnp.einsum("bhqk,bhkd->bhqd", p_attn, vh)
    o = o.transpose(0, 2, 1, 3).reshape(B, S, E)
    attn = o @ p["w_out"] + p["b_out"]

    def ln(h, g, b):
        mu = jnp.mean(h, axis=-1, keepdims=True)
        var = jnp.mean((h - mu) ** 2, axis=-1, keepdims=True)
        return (h - mu) * jax.lax.rsqrt(var + 1e-5) * g + b

    x1 = ln(attn + x, p["g1"], p["beta1"])
    f = jnp.maximum(x1 @ p["w1"] + p["b1"], 0.0) @ p["w2"] + p["b2"]
    return ln(f + x1, p["g2"], p["beta2"])


def init_params(key, hidden_size):
    E = hidden_size
    ks = jax.random.split(key, 8)
    scale = 0.1
    return {
        # MultiheadAttention: in_proj_weight (3E,E) -> stored transposed (E,3E)
        "w_in": jax.random.normal(ks[0], (E, 3 * E), jnp.float32) * scale,
        "b_in": jax.random.normal(ks[1], (1, 3 * E), jnp.float32) * scale,
        # out_proj (E,E) -> transposed
        "w_out": jax.random.normal(ks[2], (E, E), jnp.float32) * scale,
        "b_out": jax.random.normal(ks[3], (1, E), jnp.float32) * scale,
        # LayerNorm1 (PyTorch default init: weight=1, bias=0)
        "g1": jnp.ones((1, E), jnp.float32),
        "beta1": jnp.zeros((1, E), jnp.float32),
        # FF: Linear(E,E) -> ReLU -> Linear(E,E), weights stored transposed
        "w1": jax.random.normal(ks[4], (E, E), jnp.float32) * scale,
        "b1": jax.random.normal(ks[5], (1, E), jnp.float32) * scale,
        "w2": jax.random.normal(ks[6], (E, E), jnp.float32) * scale,
        "b2": jax.random.normal(ks[7], (1, E), jnp.float32) * scale,
        # LayerNorm2
        "g2": jnp.ones((1, E), jnp.float32),
        "beta2": jnp.zeros((1, E), jnp.float32),
    }


if __name__ == "__main__":
    B, S, E, H = 2, 8, 32, 4  # batch, seq, hidden_size, num_heads
    key = jax.random.PRNGKey(0)
    kx, kp = jax.random.split(key)
    x = jax.random.normal(kx, (B, S, E), jnp.float32)
    params = init_params(kp, E)

    out = transformer_block(x, params, num_heads=H)
    out = jax.block_until_ready(out)

    ref = _reference(x, params, H)
    assert out.shape == (B, S, E)
    max_err = float(jnp.max(jnp.abs(out - ref)))
    # Kernel uses bf16 MXU operands (f32 accumulation); reference is pure f32,
    # so allow a bf16-level tolerance.
    assert jnp.allclose(out, ref, atol=2e-2, rtol=2e-2), (
        f"mismatch vs reference (max abs err {max_err:.3e})")
    print("KERNEL_OK")
</pallas_src>

<mosaic_0001>
module attributes {stable_mosaic.version = 11 : i64} {
  func.func @transformer_block_kernel(%arg0: i32, %arg1: memref<1x8x32xf32, #tpu.memory_space<vmem>>, %arg2: memref<32x96xbf16, #tpu.memory_space<vmem>>, %arg3: memref<1x96xf32, #tpu.memory_space<vmem>>, %arg4: memref<32x32xbf16, #tpu.memory_space<vmem>>, %arg5: memref<1x32xf32, #tpu.memory_space<vmem>>, %arg6: memref<1x32xf32, #tpu.memory_space<vmem>>, %arg7: memref<1x32xf32, #tpu.memory_space<vmem>>, %arg8: memref<32x32xbf16, #tpu.memory_space<vmem>>, %arg9: memref<1x32xf32, #tpu.memory_space<vmem>>, %arg10: memref<32x32xbf16, #tpu.memory_space<vmem>>, %arg11: memref<1x32xf32, #tpu.memory_space<vmem>>, %arg12: memref<1x32xf32, #tpu.memory_space<vmem>>, %arg13: memref<1x32xf32, #tpu.memory_space<vmem>>, %arg14: memref<1x8x32xf32, #tpu.memory_space<vmem>>) attributes {dimension_semantics = [#tpu.dimension_semantics<parallel>], iteration_bounds = array<i64: 2>, scalar_prefetch = 0 : i64, scratch_operands = 0 : i64, tpu.core_type = #tpu.core_type<tc>, window_params = [{transform_indices = @transform_0, window_bounds = array<i64: 1, 8, 32>}, {pipeline_mode = #tpu.pipeline_mode<synchronous>, transform_indices = @transform_1, window_bounds = array<i64: 32, 96>}, {pipeline_mode = #tpu.pipeline_mode<synchronous>, transform_indices = @transform_2, window_bounds = array<i64: 1, 96>}, {pipeline_mode = #tpu.pipeline_mode<synchronous>, transform_indices = @transform_3, window_bounds = array<i64: 32, 32>}, {pipeline_mode = #tpu.pipeline_mode<synchronous>, transform_indices = @transform_4, window_bounds = array<i64: 1, 32>}, {pipeline_mode = #tpu.pipeline_mode<synchronous>, transform_indices = @transform_5, window_bounds = array<i64: 1, 32>}, {pipeline_mode = #tpu.pipeline_mode<synchronous>, transform_indices = @transform_6, window_bounds = array<i64: 1, 32>}, {pipeline_mode = #tpu.pipeline_mode<synchronous>, transform_indices = @transform_7, window_bounds = array<i64: 32, 32>}, {pipeline_mode = #tpu.pipeline_mode<synchronous>, transform_indices = @transform_8, window_bounds = array<i64: 1, 32>}, {pipeline_mode = #tpu.pipeline_mode<synchronous>, transform_indices = @transform_9, window_bounds = array<i64: 32, 32>}, {pipeline_mode = #tpu.pipeline_mode<synchronous>, transform_indices = @transform_10, window_bounds = array<i64: 1, 32>}, {pipeline_mode = #tpu.pipeline_mode<synchronous>, transform_indices = @transform_11, window_bounds = array<i64: 1, 32>}, {pipeline_mode = #tpu.pipeline_mode<synchronous>, transform_indices = @transform_12, window_bounds = array<i64: 1, 32>}, {transform_indices = @transform_13, window_bounds = array<i64: 1, 8, 32>}]} {
    %c0 = arith.constant 0 : index
    %c0_0 = arith.constant 0 : index
    %c0_1 = arith.constant 0 : index
    %0 = vector.load %arg1[%c0, %c0_0, %c0_1] : memref<1x8x32xf32, #tpu.memory_space<vmem>>, vector<1x8x32xf32>
    %1 = vector.shape_cast %0 : vector<1x8x32xf32> to vector<8x32xf32>
    %2 = arith.truncf %1 : vector<8x32xf32> to vector<8x32xbf16>
    %c0_2 = arith.constant 0 : index
    %c0_3 = arith.constant 0 : index
    %3 = vector.load %arg2[%c0_2, %c0_3] : memref<32x96xbf16, #tpu.memory_space<vmem>>, vector<32x96xbf16>
    %cst = arith.constant dense<0.000000e+00> : vector<8x96xf32>
    %4 = tpu.matmul %2, %3, %cst {dimension_numbers = #tpu.dot_dimension_numbers<[1], [0], [0], [1], [0, 0, 1, 1], [], []>} : vector<8x32xbf16>, vector<32x96xbf16>, vector<8x96xf32> -> vector<8x96xf32>
    %c0_4 = arith.constant 0 : index
    %c0_5 = arith.constant 0 : index
    %5 = vector.load %arg3[%c0_4, %c0_5] : memref<1x96xf32, #tpu.memory_space<vmem>>, vector<1x96xf32>
    %6 = vector.broadcast %5 : vector<1x96xf32> to vector<8x96xf32>
    %7 = arith.addf %4, %6 : vector<8x96xf32>
    %8 = arith.truncf %7 : vector<8x96xf32> to vector<8x96xbf16>
    %9 = vector.extract_strided_slice %8 {offsets = [0, 0], sizes = [8, 32], strides = [1, 1]} : vector<8x96xbf16> to vector<8x32xbf16>
    %10 = vector.shape_cast %9 : vector<8x32xbf16> to vector<1x8x4x8xbf16>
    %11 = tpu.transpose %10, [0, 2, 1, 3] : vector<1x8x4x8xbf16> -> vector<1x4x8x8xbf16>
    %12 = vector.shape_cast %11 : vector<1x4x8x8xbf16> to vector<4x8x8xbf16>
    %13 = vector.extract_strided_slice %8 {offsets = [0, 32], sizes = [8, 32], strides = [1, 1]} : vector<8x96xbf16> to vector<8x32xbf16>
    %14 = vector.shape_cast %13 : vector<8x32xbf16> to vector<1x8x4x8xbf16>
    %15 = tpu.transpose %14, [0, 2, 1, 3] : vector<1x8x4x8xbf16> -> vector<1x4x8x8xbf16>
    %16 = vector.shape_cast %15 : vector<1x4x8x8xbf16> to vector<4x8x8xbf16>
    %17 = vector.extract_strided_slice %8 {offsets = [0, 64], sizes = [8, 32], strides = [1, 1]} : vector<8x96xbf16> to vector<8x32xbf16>
    %18 = vector.shape_cast %17 : vector<8x32xbf16> to vector<1x8x4x8xbf16>
    %19 = tpu.transpose %18, [0, 2, 1, 3] : vector<1x8x4x8xbf16> -> vector<1x4x8x8xbf16>
    %20 = vector.shape_cast %19 : vector<1x4x8x8xbf16> to vector<4x8x8xbf16>
    "tpu.trace_start"() <{level = 10 : i32, message = "bqd,bkd->bqk"}> : () -> ()
    %cst_6 = arith.constant dense<0.000000e+00> : vector<4x8x8xf32>
    %21 = tpu.matmul %12, %16, %cst_6 {dimension_numbers = #tpu.dot_dimension_numbers<[2], [2], [1], [1], [0, 0, 0, 1, 1, 1], [0], [0]>} : vector<4x8x8xbf16>, vector<4x8x8xbf16>, vector<4x8x8xf32> -> vector<4x8x8xf32>
    "tpu.trace_stop"() : () -> ()
    %cst_7 = arith.constant dense<0xFF800000> : vector<4x8xf32>
    %22 = vector.multi_reduction <maximumf>, %21, %cst_7 [2] : vector<4x8x8xf32> to vector<4x8xf32>
    %23 = vector.shape_cast %22 : vector<4x8xf32> to vector<4x8x1xf32>
    %24 = vector.broadcast %23 : vector<4x8x1xf32> to vector<4x8x8xf32>
    %25 = arith.subf %21, %24 : vector<4x8x8xf32>
    %26 = math.exp %25 : vector<4x8x8xf32>
    %cst_8 = arith.constant dense<0.000000e+00> : vector<4x8xf32>
    %27 = vector.multi_reduction <add>, %26, %cst_8 [2] : vector<4x8x8xf32> to vector<4x8xf32>
    %28 = vector.shape_cast %27 : vector<4x8xf32> to vector<4x8x1xf32>
    %29 = arith.truncf %26 : vector<4x8x8xf32> to vector<4x8x8xbf16>
    "tpu.trace_start"() <{level = 10 : i32, message = "bqk,bkd->bqd"}> : () -> ()
    %cst_9 = arith.constant dense<0.000000e+00> : vector<4x8x8xf32>
    %30 = tpu.matmul %29, %20, %cst_9 {dimension_numbers = #tpu.dot_dimension_numbers<[2], [1], [1], [2], [0, 0, 0, 1, 1, 2], [0], [0]>} : vector<4x8x8xbf16>, vector<4x8x8xbf16>, vector<4x8x8xf32> -> vector<4x8x8xf32>
    "tpu.trace_stop"() : () -> ()
    %31 = tpu.reciprocal %28 {approx = true} : vector<4x8x1xf32> -> vector<4x8x1xf32>
    %32 = vector.broadcast %31 : vector<4x8x1xf32> to vector<4x8x8xf32>
    %33 = arith.mulf %30, %32 : vector<4x8x8xf32>
    %34 = arith.truncf %33 : vector<4x8x8xf32> to vector<4x8x8xbf16>
    %35 = vector.shape_cast %34 : vector<4x8x8xbf16> to vector<1x4x8x8xbf16>
    %36 = tpu.transpose %35, [0, 2, 1, 3] : vector<1x4x8x8xbf16> -> vector<1x8x4x8xbf16>
    %37 = vector.shape_cast %36 : vector<1x8x4x8xbf16> to vector<8x32xbf16>
    %c0_10 = arith.constant 0 : index
    %c0_11 = arith.constant 0 : index
    %38 = vector.load %arg4[%c0_10, %c0_11] : memref<32x32xbf16, #tpu.memory_space<vmem>>, vector<32x32xbf16>
    %cst_12 = arith.constant dense<0.000000e+00> : vector<8x32xf32>
    %39 = tpu.matmul %37, %38, %cst_12 {dimension_numbers = #tpu.dot_dimension_numbers<[1], [0], [0], [1], [0, 0, 1, 1], [], []>} : vector<8x32xbf16>, vector<32x32xbf16>, vector<8x32xf32> -> vector<8x32xf32>
    %c0_13 = arith.constant 0 : index
    %c0_14 = arith.constant 0 : index
    %40 = vector.load %arg5[%c0_13, %c0_14] : memref<1x32xf32, #tpu.memory_space<vmem>>, vector<1x32xf32>
    %41 = vector.broadcast %40 : vector<1x32xf32> to vector<8x32xf32>
    %42 = arith.addf %39, %41 : vector<8x32xf32>
    %43 = arith.addf %42, %1 : vector<8x32xf32>
    %cst_15 = arith.constant dense<0.000000e+00> : vector<8xf32>
    %44 = vector.multi_reduction <add>, %43, %cst_15 [1] : vector<8x32xf32> to vector<8xf32>
    %45 = vector.shape_cast %44 : vector<8xf32> to vector<8x1xf32>
    %cst_16 = arith.constant 3.200000e+01 : f32
    %46 = vector.broadcast %cst_16 : f32 to vector<8x1xf32>
    %47 = arith.divf %45, %46 : vector<8x1xf32>
    %48 = vector.broadcast %47 : vector<8x1xf32> to vector<8x32xf32>
    %49 = arith.subf %43, %48 : vector<8x32xf32>
    %50 = arith.mulf %49, %49 : vector<8x32xf32>
    %cst_17 = arith.constant dense<0.000000e+00> : vector<8xf32>
    %51 = vector.multi_reduction <add>, %50, %cst_17 [1] : vector<8x32xf32> to vector<8xf32>
    %52 = vector.shape_cast %51 : vector<8xf32> to vector<8x1xf32>
    %cst_18 = arith.constant 3.200000e+01 : f32
    %53 = vector.broadcast %cst_18 : f32 to vector<8x1xf32>
    %54 = arith.divf %52, %53 : vector<8x1xf32>
    %55 = vector.broadcast %47 : vector<8x1xf32> to vector<8x32xf32>
    %56 = arith.subf %43, %55 : vector<8x32xf32>
    %cst_19 = arith.constant 9.99999974E-6 : f32
    %57 = vector.broadcast %cst_19 : f32 to vector<8x1xf32>
    %58 = arith.addf %54, %57 : vector<8x1xf32>
    %59 = math.rsqrt %58 : vector<8x1xf32>
    %60 = vector.broadcast %59 : vector<8x1xf32> to vector<8x32xf32>
    %61 = arith.mulf %56, %60 : vector<8x32xf32>
    %c0_20 = arith.constant 0 : index
    %c0_21 = arith.constant 0 : index
    %62 = vector.load %arg6[%c0_20, %c0_21] : memref<1x32xf32, #tpu.memory_space<vmem>>, vector<1x32xf32>
    %63 = vector.broadcast %62 : vector<1x32xf32> to vector<8x32xf32>
    %64 = arith.mulf %61, %63 : vector<8x32xf32>
    %c0_22 = arith.constant 0 : index
    %c0_23 = arith.constant 0 : index
    %65 = vector.load %arg7[%c0_22, %c0_23] : memref<1x32xf32, #tpu.memory_space<vmem>>, vector<1x32xf32>
    %66 = vector.broadcast %65 : vector<1x32xf32> to vector<8x32xf32>
    %67 = arith.addf %64, %66 : vector<8x32xf32>
    %68 = arith.truncf %67 : vector<8x32xf32> to vector<8x32xbf16>
    %c0_24 = arith.constant 0 : index
    %c0_25 = arith.constant 0 : index
    %69 = vector.load %arg8[%c0_24, %c0_25] : memref<32x32xbf16, #tpu.memory_space<vmem>>, vector<32x32xbf16>
    %cst_26 = arith.constant dense<0.000000e+00> : vector<8x32xf32>
    %70 = tpu.matmul %68, %69, %cst_26 {dimension_numbers = #tpu.dot_dimension_numbers<[1], [0], [0], [1], [0, 0, 1, 1], [], []>} : vector<8x32xbf16>, vector<32x32xbf16>, vector<8x32xf32> -> vector<8x32xf32>
    %c0_27 = arith.constant 0 : index
    %c0_28 = arith.constant 0 : index
    %71 = vector.load %arg9[%c0_27, %c0_28] : memref<1x32xf32, #tpu.memory_space<vmem>>, vector<1x32xf32>
    %72 = vector.broadcast %71 : vector<1x32xf32> to vector<8x32xf32>
    %73 = arith.addf %70, %72 : vector<8x32xf32>
    %cst_29 = arith.constant 0.000000e+00 : f32
    %74 = vector.broadcast %cst_29 : f32 to vector<8x32xf32>
    %75 = arith.maximumf %73, %74 : vector<8x32xf32>
    %76 = arith.truncf %75 : vector<8x32xf32> to vector<8x32xbf16>
    %c0_30 = arith.constant 0 : index
    %c0_31 = arith.constant 0 : index
    %77 = vector.load %arg10[%c0_30, %c0_31] : memref<32x32xbf16, #tpu.memory_space<vmem>>, vector<32x32xbf16>
    %cst_32 = arith.constant dense<0.000000e+00> : vector<8x32xf32>
    %78 = tpu.matmul %76, %77, %cst_32 {dimension_numbers = #tpu.dot_dimension_numbers<[1], [0], [0], [1], [0, 0, 1, 1], [], []>} : vector<8x32xbf16>, vector<32x32xbf16>, vector<8x32xf32> -> vector<8x32xf32>
    %c0_33 = arith.constant 0 : index
    %c0_34 = arith.constant 0 : index
    %79 = vector.load %arg11[%c0_33, %c0_34] : memref<1x32xf32, #tpu.memory_space<vmem>>, vector<1x32xf32>
    %80 = vector.broadcast %79 : vector<1x32xf32> to vector<8x32xf32>
    %81 = arith.addf %78, %80 : vector<8x32xf32>
    %82 = arith.addf %81, %67 : vector<8x32xf32>
    %cst_35 = arith.constant dense<0.000000e+00> : vector<8xf32>
    %83 = vector.multi_reduction <add>, %82, %cst_35 [1] : vector<8x32xf32> to vector<8xf32>
    %84 = vector.shape_cast %83 : vector<8xf32> to vector<8x1xf32>
    %cst_36 = arith.constant 3.200000e+01 : f32
    %85 = vector.broadcast %cst_36 : f32 to vector<8x1xf32>
    %86 = arith.divf %84, %85 : vector<8x1xf32>
    %87 = vector.broadcast %86 : vector<8x1xf32> to vector<8x32xf32>
    %88 = arith.subf %82, %87 : vector<8x32xf32>
    %89 = arith.mulf %88, %88 : vector<8x32xf32>
    %cst_37 = arith.constant dense<0.000000e+00> : vector<8xf32>
    %90 = vector.multi_reduction <add>, %89, %cst_37 [1] : vector<8x32xf32> to vector<8xf32>
    %91 = vector.shape_cast %90 : vector<8xf32> to vector<8x1xf32>
    %cst_38 = arith.constant 3.200000e+01 : f32
    %92 = vector.broadcast %cst_38 : f32 to vector<8x1xf32>
    %93 = arith.divf %91, %92 : vector<8x1xf32>
    %94 = vector.broadcast %86 : vector<8x1xf32> to vector<8x32xf32>
    %95 = arith.subf %82, %94 : vector<8x32xf32>
    %cst_39 = arith.constant 9.99999974E-6 : f32
    %96 = vector.broadcast %cst_39 : f32 to vector<8x1xf32>
    %97 = arith.addf %93, %96 : vector<8x1xf32>
    %98 = math.rsqrt %97 : vector<8x1xf32>
    %99 = vector.broadcast %98 : vector<8x1xf32> to vector<8x32xf32>
    %100 = arith.mulf %95, %99 : vector<8x32xf32>
    %c0_40 = arith.constant 0 : index
    %c0_41 = arith.constant 0 : index
    %101 = vector.load %arg12[%c0_40, %c0_41] : memref<1x32xf32, #tpu.memory_space<vmem>>, vector<1x32xf32>
    %102 = vector.broadcast %101 : vector<1x32xf32> to vector<8x32xf32>
    %103 = arith.mulf %100, %102 : vector<8x32xf32>
    %c0_42 = arith.constant 0 : index
    %c0_43 = arith.constant 0 : index
    %104 = vector.load %arg13[%c0_42, %c0_43] : memref<1x32xf32, #tpu.memory_space<vmem>>, vector<1x32xf32>
    %105 = vector.broadcast %104 : vector<1x32xf32> to vector<8x32xf32>
    %106 = arith.addf %103, %105 : vector<8x32xf32>
    %107 = vector.shape_cast %106 : vector<8x32xf32> to vector<1x8x32xf32>
    %c0_44 = arith.constant 0 : index
    %c0_45 = arith.constant 0 : index
    %c0_46 = arith.constant 0 : index
    %108 = vector.load %arg14[%c0_44, %c0_45, %c0_46] : memref<1x8x32xf32, #tpu.memory_space<vmem>>, vector<1x8x32xf32>
    tpu.vector_store %arg14[%c0_44, %c0_45, %c0_46], %107 {strides = array<i32>} : memref<1x8x32xf32, #tpu.memory_space<vmem>>, vector<1x8x32xf32>,
    return
  }
  func.func @transform_0(%arg0: i32) -> (i32, i32, i32) {
    %c0_i32 = arith.constant 0 : i32
    %c0_i32_0 = arith.constant 0 : i32
    %c0_i32_1 = arith.constant 0 : i32
    return %arg0, %c0_i32, %c0_i32_0 : i32, i32, i32
  }
  func.func @transform_1(%arg0: i32) -> (i32, i32) {
    %c0_i32 = arith.constant 0 : i32
    %c0_i32_0 = arith.constant 0 : i32
    %c0_i32_1 = arith.constant 0 : i32
    return %c0_i32, %c0_i32_0 : i32, i32
  }
  func.func @transform_2(%arg0: i32) -> (i32, i32) {
    %c0_i32 = arith.constant 0 : i32
    %c0_i32_0 = arith.constant 0 : i32
    %c0_i32_1 = arith.constant 0 : i32
    return %c0_i32, %c0_i32_0 : i32, i32
  }
  func.func @transform_3(%arg0: i32) -> (i32, i32) {
    %c0_i32 = arith.constant 0 : i32
    %c0_i32_0 = arith.constant 0 : i32
    %c0_i32_1 = arith.constant 0 : i32
    return %c0_i32, %c0_i32_0 : i32, i32
  }
  func.func @transform_4(%arg0: i32) -> (i32, i32) {
    %c0_i32 = arith.constant 0 : i32
    %c0_i32_0 = arith.constant 0 : i32
    %c0_i32_1 = arith.constant 0 : i32
    return %c0_i32, %c0_i32_0 : i32, i32
  }
  func.func @transform_5(%arg0: i32) -> (i32, i32) {
    %c0_i32 = arith.constant 0 : i32
    %c0_i32_0 = arith.constant 0 : i32
    %c0_i32_1 = arith.constant 0 : i32
    return %c0_i32, %c0_i32_0 : i32, i32
  }
  func.func @transform_6(%arg0: i32) -> (i32, i32) {
    %c0_i32 = arith.constant 0 : i32
    %c0_i32_0 = arith.constant 0 : i32
    %c0_i32_1 = arith.constant 0 : i32
    return %c0_i32, %c0_i32_0 : i32, i32
  }
  func.func @transform_7(%arg0: i32) -> (i32, i32) {
    %c0_i32 = arith.constant 0 : i32
    %c0_i32_0 = arith.constant 0 : i32
    %c0_i32_1 = arith.constant 0 : i32
    return %c0_i32, %c0_i32_0 : i32, i32
  }
  func.func @transform_8(%arg0: i32) -> (i32, i32) {
    %c0_i32 = arith.constant 0 : i32
    %c0_i32_0 = arith.constant 0 : i32
    %c0_i32_1 = arith.constant 0 : i32
    return %c0_i32, %c0_i32_0 : i32, i32
  }
  func.func @transform_9(%arg0: i32) -> (i32, i32) {
    %c0_i32 = arith.constant 0 : i32
    %c0_i32_0 = arith.constant 0 : i32
    %c0_i32_1 = arith.constant 0 : i32
    return %c0_i32, %c0_i32_0 : i32, i32
  }
  func.func @transform_10(%arg0: i32) -> (i32, i32) {
    %c0_i32 = arith.constant 0 : i32
    %c0_i32_0 = arith.constant 0 : i32
    %c0_i32_1 = arith.constant 0 : i32
    return %c0_i32, %c0_i32_0 : i32, i32
  }
  func.func @transform_11(%arg0: i32) -> (i32, i32) {
    %c0_i32 = arith.constant 0 : i32
    %c0_i32_0 = arith.constant 0 : i32
    %c0_i32_1 = arith.constant 0 : i32
    return %c0_i32, %c0_i32_0 : i32, i32
  }
  func.func @transform_12(%arg0: i32) -> (i32, i32) {
    %c0_i32 = arith.constant 0 : i32
    %c0_i32_0 = arith.constant 0 : i32
    %c0_i32_1 = arith.constant 0 : i32
    return %c0_i32, %c0_i32_0 : i32, i32
  }
  func.func @transform_13(%arg0: i32) -> (i32, i32, i32) {
    %c0_i32 = arith.constant 0 : i32
    %c0_i32_0 = arith.constant 0 : i32
    %c0_i32_1 = arith.constant 0 : i32
    return %arg0, %c0_i32, %c0_i32_0 : i32, i32, i32
  }
}

</mosaic_0001>

<bundles_post_ra>
// kernel: tpu_custom_call.1
= control target key start
LH: loop header
LB: loop body
LE: loop exit
PB: predicated region body
PF: predicated region fallthrough
CT: control target
= control target key end

     0   :  { %s3270_s0 = inlined_call_operand.hbm [shape: f32[2,8,32], index: 0, kind: input, shape index: {}]   ;;  %s3271_s1 = inlined_call_operand.hbm [shape: bf16[32,96], index: 1, kind: input, shape index: {}]   ;;  %s3272_s2 = inlined_call_operand.vmem [shape: f32[1,96], index: 2, kind: input, shape index: {}]   ;;  %s3273_s3 = inlined_call_operand.hbm [shape: bf16[32,32], index: 3, kind: input, shape index: {}]   ;;  %s3274_s4 = inlined_call_operand.vmem [shape: f32[1,32], index: 4, kind: input, shape index: {}]   ;;  %s3275_s5 = inlined_call_operand.hbm [shape: f32[1,32], index: 5, kind: input, shape index: {}]   ;;  %s3276_s6 = inlined_call_operand.hbm [shape: f32[1,32], index: 6, kind: input, shape index: {}]   ;;  %s3277_s7 = inlined_call_operand.vmem [shape: bf16[32,32], index: 7, kind: input, shape index: {}]   ;;  %s3278_s8 = inlined_call_operand.hbm [shape: f32[1,32], index: 8, kind: input, shape index: {}]   ;;  %s3279_s9 = inlined_call_operand.vmem [shape: bf16[32,32], index: 9, kind: input, shape index: {}]   ;;  %s3280_s10 = inlined_call_operand.vmem [shape: f32[1,32], index: 10, kind: input, shape index: {}]   ;;  %s3281_s11 = inlined_call_operand.vmem [shape: f32[1,32], index: 11, kind: input, shape index: {}]   ;;  %s3282_s12 = inlined_call_operand.vmem [shape: f32[1,32], index: 12, kind: input, shape index: {}]   ;;  %s3283_s13 = inlined_call_operand.hbm [shape: f32[2,8,32], index: 13, kind: output, shape index: {}]  }
   0x1   :  { %3289 = sst [smem:[#allocation19_spill]] %s3270_s0 }
   0x2   :  { %3290 = sst [smem:[#allocation20_spill]] %s3271_s1 }
   0x3   :  { %3291 = sst [smem:[#allocation21_spill]] %s3272_s2 }
   0x4   :  { %3292 = sst [smem:[#allocation22_spill]] %s3279_s9 }
   0x5   :  { %3293 = sst [smem:[#allocation23_spill]] %s3280_s10 }
   0x6   :  { %3294 = sst [smem:[#allocation24_spill]] %s3281_s11 }
   0x7   :  { %3295 = sst [smem:[#allocation25_spill]] %s3282_s12 }
   0x8   :  { %3296 = sst [smem:[#allocation26_spill]] %s3283_s13 }
   0x9   :  { %18 = vsyncpa [#allocation3], 0 }
   0xa   :  { %20 = vsyncpa [#allocation3 + $0x1], 0 }
   0xb   :  { %21 = vsyncpa [#allocation6], 0 }
   0xc   :  { %22 = vsyncpa [#allocation9], 0 }
   0xd   :  { %23 = vsyncpa [#allocation12], 0 }
   0xe   :  { %24 = vsyncpa [#allocation4], 0 }
   0xf   :  { %26 = vsyncpa [#allocation4 + $0x1], 0  ;;  %s2731_s25 = smov 0   ;;  %s2733_s26 = smov 0  }
  0x10   :  { %s2735_s27 = smov 0   ;;  %s2737_s28 = smov 0  }
  0x11 LB: > { %s2639_s29 = smov [#allocation5]   ;;  %s2752_s14 = sadd.s32 4294967295, %s2637_s28   ;;  %s2637_s28 = sphi %s2737_s28, %s3326_s28   ;;  %s2633_s27 = sphi %s2735_s27, %s3325_s27   ;;  %s2629_s26 = sphi %s2733_s26, %s3324_s26   ;;  %s2625_s25 = sphi %s2731_s25, %s3323_s25  }
  0x12   : > { %s353_s30 = sshll.u32 %s2639_s29, 4  ;;  %p2092_p0 = scmp.ge.s32.totalorder %s2637_s28, 1  ;;  %s2757_s30 = int_to_ptr.vmem [resolvable:$true] %s353_s30 }
  0x13   : > { %p3286_p1 = scmp.eq.s32.totalorder %s2752_s14, 0  ;;  %p341_p2 = scmp.lt.s32.totalorder %s2637_s28, 3 }
  0x14   : > { %s2640_s16 = smov [#allocation8]   ;;  %s2641_s19 = smov [#allocation7]  }
  0x15   : > { %p2759_p3 = pnand %p2092_p0, %p341_p2  ;;  %s386_s17 = sshll.u32 %s2640_s16, 4  ;;  %s2772_s17 = int_to_ptr.vmem [resolvable:$true] %s386_s17 }
  0x16   : > { %s369_s20 = sshll.u32 %s2641_s19, 4  ;;  %s3299_s1 = sld [smem:[#allocation20_spill]]  ;;  %s2774_s20 = int_to_ptr.vmem [resolvable:$true] %s369_s20 }
  0x17   : > { %s3297_s15 = scalar_select %p2759_p3, 1, 0 }
  0x18   : > { %p2273_p5 = pneg %p2759_p3 }
  0x1a   : > { %p2768_p6 = pnand %p2273_p5, %p3286_p1 }
  0x1c   : > { %s2389_s23 = scalar_lea.hbm %s3299_s1, 256  ;;  %p2784_p8 = pneg %p2768_p6 }
  0x1d   : > { %p2390_p7 = scmp.ne.s32.totalorder %s3299_s1, %s2389_s23  ;;  %p2396_p11 = scmp.lt.u32.totalorder %s2389_s23, %s3299_s1 }
  0x1f   : > { %p2392_p9 = pnand %p2784_p8, %p2390_p7 }
  0x21   : > { %p2393_p10 = pneg %p2392_p9 }
  0x23   : > { %p2398_p12 = pnand %p2396_p11, %p2393_p10 }
  0x25   : > { %2401 = shalt.err (!%p2398_p12)
}
  0x26   : > { %s2402_s21 = scalar_lea.vmem %s2757_s30, 256  ;;  %p2410_p5 = scmp.lt.s32.totalorder %s2757_s30, %s2757_s30 }
  0x27   : > { %p2403_p13 = scmp.ne.s32.totalorder %s2757_s30, %s2402_s21  ;;  %p2411_p4 = scmp.lt.s32.totalorder %s2402_s21, %s2402_s21 }
  0x29   : > { %p2405_p0 = pnand %p2403_p13, %p2784_p8  ;;  %p2412_p7 = por %p2411_p4, %p2410_p5 }
  0x2b   : > { %p2406_p2 = pneg %p2405_p0 }
  0x2d   : > { %p2413_p9 = pnand %p2412_p7, %p2406_p2 }
  0x2f   : > { %2416 = shalt.err (!%p2413_p9)
}
  0x30   : > { %s2642_s22 = smov 64   ;;  %s2643_s13 = smov 4  }
  0x31   : > { %2276 = dma.hbm_to_vmem [thread:$0]  (!%p2768_p6), %s3299_s1, 256, %s2757_s30, [#allocation6], %s2642_s22, %s2642_s22, %s2643_s13  }
  0x32   : > { %s2417_s21 = scalar_lea.hbm %s3275_s5, 16 }
  0x33   : > { %p2418_p4 = scmp.ne.s32.totalorder %s3275_s5, %s2417_s21  ;;  %p2424_p12 = scmp.lt.u32.totalorder %s2417_s21, %s3275_s5 }
  0x35   : > { %p2420_p10 = pnand %p2418_p4, %p2784_p8 }
  0x37   : > { %p2421_p11 = pneg %p2420_p10 }
  0x39   : > { %p2426_p13 = pnand %p2424_p12, %p2421_p11 }
  0x3b   : > { %2429 = shalt.err (!%p2426_p13)
}
  0x3c   : > { %s2430_s30 = scalar_lea.vmem %s2772_s17, 16  ;;  %s2437_s11 = scalar_lea.vmem %s2772_s17, 32 }
  0x3d   : > { %p2431_p0 = scmp.ne.s32.totalorder %s2772_s17, %s2430_s30  ;;  %p2438_p7 = scmp.lt.s32.totalorder %s2772_s17, %s2772_s17 }
  0x3e   : > { %p2439_p9 = scmp.lt.s32.totalorder %s2437_s11, %s2430_s30 }
  0x3f   : > { %p2433_p2 = pnand %p2431_p0, %p2784_p8 }
  0x40   : > { %p2440_p4 = por %p2439_p9, %p2438_p7 }
  0x41   : > { %p2434_p5 = pneg %p2433_p2 }
  0x43   : > { %p2441_p10 = pnand %p2440_p4, %p2434_p5 }
  0x45   : > { %2444 = shalt.err (!%p2441_p10)
}
  0x46   : > { %2282 = dma.hbm_to_vmem [thread:$0]  (!%p2768_p6), %s3275_s5, 16, %s2772_s17, [#allocation9]  }
  0x47   : > { %s2445_s24 = scalar_lea.hbm %s3273_s3, 256 }
  0x48   : > { %p2446_p11 = scmp.ne.s32.totalorder %s3273_s3, %s2445_s24  ;;  %p2452_p0 = scmp.lt.u32.totalorder %s2445_s24, %s3273_s3 }
  0x4a   : > { %p2448_p12 = pnand %p2446_p11, %p2784_p8 }
  0x4c   : > { %p2449_p13 = pneg %p2448_p12 }
  0x4e   : > { %p2454_p2 = pnand %p2452_p0, %p2449_p13 }
  0x50   : > { %2457 = shalt.err (!%p2454_p2)
}
  0x51   : > { %s2458_s17 = scalar_lea.vmem %s2774_s20, 256  ;;  %p2466_p4 = scmp.lt.s32.totalorder %s2774_s20, %s2774_s20 }
  0x52   : > { %p2459_p5 = scmp.ne.s32.totalorder %s2774_s20, %s2458_s17  ;;  %p2467_p10 = scmp.lt.s32.totalorder %s2458_s17, %s2458_s17 }
  0x54   : > { %p2461_p7 = pnand %p2459_p5, %p2784_p8  ;;  %p2468_p11 = por %p2467_p10, %p2466_p4 }
  0x56   : > { %p2462_p9 = pneg %p2461_p7 }
  0x58   : > { %p2469_p12 = pnand %p2468_p11, %p2462_p9 }
  0x5a   : > { %2472 = shalt.err (!%p2469_p12)
}
  0x5b   : > { %2279 = dma.hbm_to_vmem [thread:$0]  (!%p2768_p6), %s3273_s3, 256, %s2774_s20, [#allocation6], %s2642_s22, %s2642_s22, %s2643_s13  }
  0x5c   : > { %s2644_s10 = smov [#allocation10]   ;;  %s2645_s23 = smov [#allocation11]  }
  0x5d   : > { %s397_s12 = sshll.u32 %s2644_s10, 4  ;;  %s411_s24 = sshll.u32 %s2645_s23, 4  ;;  %s398_s12 = int_to_ptr.vmem [resolvable:$true] %s397_s12  ;;  %s412_s24 = int_to_ptr.vmem [resolvable:$true] %s411_s24 }
  0x5e   : > { %s2473_s21 = scalar_lea.hbm %s3276_s6, 16 }
  0x5f   : > { %p2474_p13 = scmp.ne.s32.totalorder %s3276_s6, %s2473_s21  ;;  %p2480_p5 = scmp.lt.u32.totalorder %s2473_s21, %s3276_s6 }
  0x61   : > { %p2476_p0 = pnand %p2474_p13, %p2784_p8 }
  0x63   : > { %p2477_p2 = pneg %p2476_p0 }
  0x65   : > { %p2482_p7 = pnand %p2480_p5, %p2477_p2 }
  0x67   : > { %2485 = shalt.err (!%p2482_p7)
}
  0x68   : > { %s2486_s20 = scalar_lea.vmem %s398_s12, 16  ;;  %s2493_s22 = scalar_lea.vmem %s398_s12, 32 }
  0x69   : > { %p2487_p9 = scmp.ne.s32.totalorder %s398_s12, %s2486_s20  ;;  %p2494_p11 = scmp.lt.s32.totalorder %s398_s12, %s398_s12 }
  0x6a   : > { %p2495_p12 = scmp.lt.s32.totalorder %s2493_s22, %s2486_s20 }
  0x6b   : > { %p2489_p4 = pnand %p2487_p9, %p2784_p8 }
  0x6c   : > { %p2496_p1 = por %p2495_p12, %p2494_p11 }
  0x6d   : > { %p2490_p10 = pneg %p2489_p4 }
  0x6f   : > { %p2497_p3 = pnand %p2496_p1, %p2490_p10 }
  0x71   : > { %2500 = shalt.err (!%p2497_p3)
}
  0x72   : > { %2285 = dma.hbm_to_vmem [thread:$0]  (!%p2768_p6), %s3276_s6, 16, %s398_s12, [#allocation9]  }
  0x73   : > { %s2501_s23 = scalar_lea.hbm %s3278_s8, 16 }
  0x74   : > { %p2502_p13 = scmp.ne.s32.totalorder %s3278_s8, %s2501_s23  ;;  %p2508_p3 = scmp.lt.u32.totalorder %s2501_s23, %s3278_s8 }
  0x76   : > { %p2504_p0 = pnand %p2502_p13, %p2784_p8 }
  0x78   : > { %p2505_p1 = pneg %p2504_p0 }
  0x7a   : > { %p2510_p2 = pnand %p2508_p3, %p2505_p1 }
  0x7c   : > { %2513 = shalt.err (!%p2510_p2)
}
  0x7d   : > { %s2514_s17 = scalar_lea.vmem %s412_s24, 16  ;;  %s2521_s12 = scalar_lea.vmem %s412_s24, 32 }
  0x7e   : > { %p2515_p5 = scmp.ne.s32.totalorder %s412_s24, %s2514_s17  ;;  %p2522_p4 = scmp.lt.s32.totalorder %s412_s24, %s412_s24 }
  0x7f   : > { %p2523_p10 = scmp.lt.s32.totalorder %s2521_s12, %s2514_s17 }
  0x80   : > { %p2517_p7 = pnand %p2515_p5, %p2784_p8 }
  0x81   : > { %p2524_p11 = por %p2523_p10, %p2522_p4 }
  0x82   : > { %p2518_p9 = pneg %p2517_p7 }
  0x84   : > { %p2525_p12 = pnand %p2524_p11, %p2518_p9 }
  0x86   : > { %2528 = shalt.err (!%p2525_p12)
}
  0x87   : > { %2288 = dma.hbm_to_vmem [thread:$0]  (!%p2768_p6), %s3278_s8, 16, %s412_s24, [#allocation12]  }
  0x88   : > { %s2091_s16 = sadd.s32 4294967294, %s2637_s28   ;;  %s2896_s18 = sadd.s32 1, %s2637_s28  }
  0x89   : > { %s39_s22 = sadd.s32 1, %s2633_s27  ;;  %s36_s13 = ssub.s32 %s2637_s28, %s2896_s18 }
  0x8a   : > { %p46_p8 = scmp.ne.s32.totalorder %s2633_s27, %s2629_s26  ;;  %p37_p13 = scmp.eq.s32.totalorder %s36_s13, 0 }
  0x8b   : > { %p47_p0 = scmp.eq.s32.totalorder %s2637_s28, 0  ;;  %p52_p1 = scmp.ne.s32.totalorder %s2629_s26, %s2625_s25 }
  0x8c   : > { %p328_p3 = scmp.eq.s32.totalorder %s2752_s14, 1  ;;  %p3301_p5 = scmp.eq.s32.totalorder %s2752_s14, 0 }
  0x8d   : > { %s2908_s9 = scalar_select %p37_p13, %s2633_s27, %s39_s22  }
  0x8e   : > { %p48_p2 = por %p47_p0, %p46_p8  ;;  %p2912_p7 = por %p3301_p5, %p52_p1 }
  0x8f   : > { %p2916_p6 = por %p328_p3, %p46_p8  ;;  %p334_p9 = scmp.eq.s32.totalorder %s2091_s16, 1 }
  0x90   : > { %p2302_p4 = scmp.lt.s32.totalorder %s2637_s28, 2  ;;  %s434_s10 = sand.u32 1, %s2633_s27  }
  0x91   : > { %s3303_s24 = scalar_select %p2916_p6, 1, 0 }
  0x92   : > { %p2922_p10 = por %p334_p9, %p52_p1  ;;  %s2099_s29 = sshll.u32 %s434_s10, 3 }
  0x93   : > { %s2100_s19 = sshll.u32 %s2637_s28, 7  ;;  %s3305_s0 = sld [smem:[#allocation19_spill]] }
  0x94   : > { %s3304_s23 = scalar_select %p2922_p10, 1, 0 }
  0x95   : > { %s438_s12 = scalar_lea.vmem [#allocation2], %s2099_s29  ;;  %p2932_p11 = pnand %p2302_p4, %p48_p2 }
  0x96   : > { %s445_s11 = sshll.u32 %s438_s12, 4  ;;  %s435_s16 = scalar_lea.sflag [#allocation3], %s434_s10  ;;  %s2936_s11 = int_to_ptr.vmem [resolvable:$true] %s445_s11 }
  0x97   : > { %p2531_p8 = pneg %p2932_p11 }
  0x99   : > { %s2930_s17 = scalar_lea.hbm %s3305_s0, %s2100_s19  ;;  %s2534_s19 = scalar_lea.hbm %s3305_s0, 256 }
  0x9a   : > { %s2529_s22 = scalar_lea.hbm %s2930_s17, 128  ;;  %p2535_p1 = scmp.lt.u32.totalorder %s2930_s17, %s3305_s0 }
  0x9b   : > { %p2530_p12 = scmp.ne.s32.totalorder %s2930_s17, %s2529_s22  ;;  %p2536_p3 = scmp.lt.u32.totalorder %s2534_s19, %s2529_s22 }
  0x9c   : > { %p2538_p5 = scmp.lt.u32.totalorder %s2529_s22, %s2930_s17 }
  0x9d   : > { %p2532_p13 = pnand %p2531_p8, %p2530_p12  ;;  %p2537_p2 = por %p2536_p3, %p2535_p1 }
  0x9f   : > { %p2533_p0 = pneg %p2532_p13  ;;  %p2539_p9 = por %p2538_p5, %p2537_p2 }
  0xa1   : > { %p2540_p4 = pnand %p2539_p9, %p2533_p0 }
  0xa3   : > { %2543 = shalt.err (!%p2540_p4)
}
  0xa4   : > { %s2544_s10 = scalar_lea.vmem %s2936_s11, 128  ;;  %s2646_s12 = smov [#allocation2]  }
  0xa5   : > { %p2545_p12 = scmp.ne.s32.totalorder %s2936_s11, %s2544_s10  ;;  %s2549_s13 = sshll.u32 %s2646_s12, 4  ;;  %s2550_s13 = int_to_ptr.vmem [resolvable:$false] %s2549_s13 }
  0xa6   : > { %s2551_s29 = scalar_lea.vmem %s2550_s13, 256  ;;  %p2552_p6 = scmp.lt.s32.totalorder %s2936_s11, %s2550_s13 }
  0xa7   : > { %p2547_p13 = pnand %p2545_p12, %p2531_p8  ;;  %p2553_p1 = scmp.lt.s32.totalorder %s2551_s29, %s2544_s10 }
  0xa9   : > { %p2548_p10 = pneg %p2547_p13  ;;  %p2554_p3 = por %p2553_p1, %p2552_p6 }
  0xab   : > { %p2555_p2 = pnand %p2554_p3, %p2548_p10 }
  0xad   : > { %2558 = shalt.err (!%p2555_p2)
}
  0xae   : > { %2292 = dma.hbm_to_vmem [thread:$0]  (!%p2932_p11), %s2930_s17, 128, %s2936_s11, %s435_s16  }
  0xaf   : > { %p3307_p0 = scmp.ne.s32.totalorder %s3297_s15, 0 }
  0xb0   : > { %s2966_s22 = sand.u32 (!%p3307_p0), 1, %s2629_s26  }
  0xb1   : > { %454 = sbr.rel (%p3307_p0) target bundleno = 2765 (0xacd), region = 72  ;;  %s2102_s19 = sshll.u32 (!%p3307_p0), %s2966_s22, 3 }
  0xb2   : > { %s457_s21 = scalar_lea.sflag (!%p3307_p0), [#allocation3], %s2966_s22  ;;  %s460_s30 = scalar_lea.vmem (!%p3307_p0), [#allocation2], %s2102_s19 }
  0xb8   : > { %2604 = dma.done.wait (%p2912_p7), %s457_s21, 128  }
  0xb9   : > { %2606 = vsyncadd (%p2912_p7), %s457_s21, 4294967168  ;;  %p3308_p6 = scmp.eq.s32.totalorder %s2752_s14, 0 }
  0xbb   : > { %2608 = dma.done.wait (%p3308_p6), [#allocation6], 512   ;;  %p3309_p10 = pmov %p3308_p6 }
  0xbc   : > { %p3310_p11 = pmov %p3308_p6 }
  0xbd   : > { %2610 = vsyncadd (%p3309_p10), [#allocation6], 4294966784 }
  0xbe   : > { %2612 = dma.done.wait (%p3310_p11), [#allocation9], 32   ;;  %p3311_p8 = pmov %p3308_p6 }
  0xbf   : > { %p3312_p5 = pmov %p3308_p6 }
  0xc0   : > { %2614 = vsyncadd (%p3311_p8), [#allocation9], 4294967264 }
  0xc1   : > { %2616 = dma.done.wait (%p3312_p5), [#allocation12], 16   ;;  %p3313_p9 = pmov %p3312_p5 }
  0xc2   : > { %v2647_v0 = vmov 0.0   ;;  %vm2648_vm0 = vmmov 0   ;;  %v2361_v1 = vld [vmem:[#allocation5] sm:$0xff]   ;;  %v2362_v2 = vld [vmem:[#allocation5 + $0x8] sm:$0xff]   ;;  %v2994_v3 = vld [vmem:[%s460_s30] sm:$0xff]  ;;  %vm549_vm1 = vcmask 261120   ;;  %v604_v17 = vlaneseq }
  0xc3   : > { %2618 = vsyncadd (%p3313_p9), [#allocation12], 4294967280  ;;  %2169 = vmatprep.subr.bf16.mxu0 %v2647_v0  ;;  %2173 = vmatprep.mubr.msk.bf16.mxu0 %vm2648_vm0, %v2647_v0  ;;  %v525_v4 = vpack.c.bf16 %v2994_v3, %v2994_v3  ;;  %s3314_s2 = sld [smem:[#allocation21_spill]]  ;;  %s2649_s17 = smov 104   ;;  %v2654_v15 = vmov 1983009808  }
  0xc4   : > { %2177 = vmatprep.subr.bf16.mxu1 %v2647_v0  ;;  %2179 = vmatprep.mubr.msk.bf16.mxu1 %vm2648_vm0, %v2647_v0  ;;  %s2650_s11 = smov 120   ;;  %s2651_s20 = smov 96   ;;  %v602_v16 = vunpack.c.l.s4 %v2654_v15  ;;  %v605_v19 = vshrl.u32 %v604_v17, 7  ;;  %v2655_v20 = vmov 1934713408   ;;  %v2656_v39 = vmov 0  }
  0xc5   : > { %2170 = vmatpush3.bf16.msra.mxu0 %v2361_v1  ;;  %s2652_s16 = smov 112   ;;  %s2653_s10 = smov 64   ;;  %v619_v21 = vunpack.c.l.s4 %v2655_v20  ;;  %vm1102_vm2 = vcmask 64512   ;;  %vm1330_vm3 = vcmask 1043456   ;;  %vm1691_vm4 = vcmask 130048  }
  0xc6   : > { %2171 = vmatprep.subr.bf16.mxu0 %v2647_v0  ;;  %v603_v18 = vunpack.c.0.s8 %v602_v16  ;;  %s2657_s12 = smov 8   ;;  %s2658_s13 = smov 16   ;;  %vm1694_vm5 = vcmask 195584  }
  0xc7   : > { %v620_v24 = vunpack.c.0.s8 %v619_v21  ;;  %s2659_s29 = smov 24   ;;  %s3316_s30 = sld [smem:[#allocation23_spill]] }
  0xc8   : > { %v3014_v22 = vsub.s32 %v603_v18, %v605_v19  ;;  %s3319_s0 = sld [smem:[#allocation26_spill]]  ;;  %s1960_s15 = scalar_lea.sflag [#allocation4], %s2966_s22 }
  0xc9   : > { %2172 = vmatpush3.bf16.msra.mxu0 %v2362_v2  ;;  %v2109_v5 = vld [vmem:[%s3314_s2] ss:$0 sm:$0xff]  ;;  %v3022_v28 = vsub.s32 %v620_v24, %v605_v19  ;;  %p3320_p4 = scmp.ne.s32.totalorder %s3303_s24, 0 }
  0xca   : > { %2183 = vmatprep.subr.bf16.mxu0 %v2647_v0 }
  0xcc   : > { %2174 = vmatmul.mubr.msk.bf16.vlgmr.msra.gmra.mrb[0].mxu0 %vm549_vm1, %v525_v4 }
  0xcd   : > { %2185 = vmatprep.mubr.msk.bf16.mxu0 %vm2648_vm0, %v2647_v0 }
 0x19f   : > { %v587_v6 = vpop.f32.mrb[0].mxu0 }
 0x1a0   : > { %v588_v7 = vadd.f32 %v2109_v5, %v587_v6  ;;  %v2175_v8 = vpop.f32.mrb[1].mxu0 }
 0x1a1   : > { %v590_v9 = vpop.f32.mrb[2].mxu0 }
 0x1a2   : > { %v593_v10 = vpack.c.bf16 %v588_v7, %v588_v7  ;;  %v2176_v11 = vpop.f32.mrb[3].mxu0 }
 0x1a4   : > { %599 = vrot.lane.b32.xlu1 %v593_v10, %s2649_s17  ;;  %595 = vrot.lane.b32.xlu0 %v593_v10, %s2650_s11  ;;  %v607_v27 = vrot.slane %v593_v10, %v3014_v22  ;;  %s3317_s17 = sld [smem:[#allocation24_spill]] }
 0x1a8   : > { %762 = vrot.lane.b32.xlu1 %v593_v10, %s2651_s20  ;;  %597 = vrot.lane.b32.xlu0 %v593_v10, %s2652_s16  ;;  %s3318_s16 = sld [smem:[#allocation25_spill]] }
 0x216   : > { %v596_v12 = vpop.permute.xlu0 %595  ;;  %v3006_v13 = vpop.permute.xlu1 %599 }
 0x217   : > { %764 = vrot.lane.b32.xlu0 %v596_v12, %s2651_s20  ;;  %v649_v23 = vrot.slane %v3006_v13, %v3014_v22  ;;  %v641_v25 = vrot.slane %v596_v12, %v3014_v22 }
 0x219   : > { %v650_v29 = vcombine.low %v641_v25, %v649_v23  ;;  %v651_v32 = vcombine.high %v641_v25, %v649_v23 }
 0x21a   : > { %v3008_v14 = vpop.permute.xlu0 %597  ;;  %v763_v38 = vpop.permute.xlu1 %762 }
 0x21b   : > { %768 = vrot.lane.b32.xlu0 %v3006_v13, %s2651_s20  ;;  %766 = vrot.lane.b32.xlu1 %v3008_v14, %s2651_s20  ;;  %v615_v26 = vrot.slane %v3008_v14, %v3014_v22  ;;  %v3025_v33 = vrot.slane %v650_v29, %v3022_v28  ;;  %v3034_v36 = vrot.slane %v651_v32, %v3022_v28 }
 0x21c   : > { %v777_v45 = vrot.slane %v763_v38, %v3014_v22 }
 0x21d   : > { %v616_v30 = vcombine.low %v607_v27, %v615_v26  ;;  %v617_v31 = vcombine.high %v607_v27, %v615_v26  ;;  %v666_v40 = vcombine.high %v3025_v33, %v2656_v39  ;;  %v667_v43 = vcombine.high %v3034_v36, %v2656_v39 }
 0x21e   : > { %v673_v44 = vshrl.u32 %v3025_v33, 16  ;;  %v689_v48 = vshrl.u32 %v3034_v36, 16 }
 0x21f   : > { %932 = vrot.lane.b32.xlu0 %v593_v10, %s2653_s10  ;;  %934 = vrot.lane.b32.xlu1 %v596_v12, %s2653_s10  ;;  %v3028_v34 = vrot.slane %v616_v30, %v3022_v28  ;;  %v3031_v35 = vrot.slane %v617_v31, %v3022_v28  ;;  %v681_v53 = vshrl.u32 %v666_v40, 16  ;;  %v697_v57 = vshrl.u32 %v667_v43, 16 }
 0x221   : > { %v632_v41 = vcombine.high %v3028_v34, %v2656_v39  ;;  %v633_v42 = vcombine.high %v3031_v35, %v2656_v39  ;;  %v672_v46 = vshrl.u32 %v3028_v34, 16  ;;  %v688_v49 = vshrl.u32 %v3031_v35, 16 }
 0x222   : > { %v670_v58 = vpack.i.b16 %v3025_v33, %v3028_v34  ;;  %v686_v31 = vpack.i.b16 %v3034_v36, %v3031_v35 }
 0x223   : > { %v680_v54 = vshrl.u32 %v632_v41, 16  ;;  %v696_v55 = vshrl.u32 %v633_v42, 16  ;;  %v674_v61 = vpack.i.b16 %v673_v44, %v672_v46  ;;  %v678_v62 = vpack.i.b16 %v666_v40, %v632_v41 }
 0x224   : > { %v690_v2 = vpack.i.b16 %v689_v48, %v688_v49  ;;  %v694_v4 = vpack.i.b16 %v667_v43, %v633_v42  ;;  %v700_v46 = vcombine.low %v670_v58, %v686_v31 }
 0x225   : > { %v682_v7 = vpack.i.b16 %v681_v53, %v680_v54  ;;  %v698_v8 = vpack.i.b16 %v697_v57, %v696_v55 }
 0x226   : > { %v708_v41 = vcombine.low %v678_v62, %v694_v4  ;;  %v725_v44 = vcombine.low %v674_v61, %v690_v2  ;;  %v707_v55 = vrot.slane %v700_v46, %v3014_v22 }
 0x227   : > { %v733_v40 = vcombine.low %v682_v7, %v698_v8 }
 0x228   : > { %v732_v53 = vrot.slane %v725_v44, %v3014_v22 }
 0x229   : > { %v740_v36 = vrot.slane %v733_v40, %v3014_v22 }
 0x22b   : > { %v741_v57 = vcombine.low %v732_v53, %v740_v36 }
 0x22d   : > { %v748_v2 = vrot.slane %v741_v57, %v3022_v28 }
 0x289   : > { %v765_v37 = vpop.permute.xlu0 %764 }
 0x28a   : > { %v811_v50 = vrot.slane %v765_v37, %v3014_v22 }
 0x28d   : > { %v769_v47 = vpop.permute.xlu0 %768  ;;  %v767_v51 = vpop.permute.xlu1 %766 }
 0x28e   : > { %v819_v52 = vrot.slane %v769_v47, %v3014_v22  ;;  %v785_v56 = vrot.slane %v767_v51, %v3014_v22  ;;  %v715_v51 = vrot.slane %v708_v41, %v3014_v22 }
 0x290   : > { %v820_v59 = vcombine.low %v811_v50, %v819_v52  ;;  %v821_v60 = vcombine.high %v811_v50, %v819_v52  ;;  %v786_v63 = vcombine.low %v777_v45, %v785_v56  ;;  %v787_v1 = vcombine.high %v777_v45, %v785_v56 }
 0x291   : > { %v716_v58 = vcombine.low %v707_v55, %v715_v51  ;;  %v933_v36 = vpop.permute.xlu0 %932 }
 0x292   : > { %v828_v5 = vrot.slane %v820_v59, %v3022_v28  ;;  %v835_v6 = vrot.slane %v821_v60, %v3022_v28  ;;  %v794_v9 = vrot.slane %v786_v63, %v3022_v28  ;;  %v801_v10 = vrot.slane %v787_v1, %v3022_v28 }
 0x294   : > { %v836_v11 = vcombine.high %v828_v5, %v2656_v39  ;;  %v837_v12 = vcombine.high %v835_v6, %v2656_v39  ;;  %v843_v15 = vshrl.u32 %v828_v5, 16  ;;  %v859_v16 = vshrl.u32 %v835_v6, 16 }
 0x295   : > { %v802_v17 = vcombine.high %v794_v9, %v2656_v39  ;;  %v803_v18 = vcombine.high %v801_v10, %v2656_v39  ;;  %v842_v19 = vshrl.u32 %v794_v9, 16  ;;  %v858_v20 = vshrl.u32 %v801_v10, 16 }
 0x296   : > { %v840_v21 = vpack.i.b16 %v828_v5, %v794_v9  ;;  %v851_v23 = vshrl.u32 %v836_v11, 16  ;;  %v856_v24 = vpack.i.b16 %v835_v6, %v801_v10  ;;  %v867_v25 = vshrl.u32 %v837_v12, 16 }
 0x297   : > { %v850_v26 = vshrl.u32 %v802_v17, 16  ;;  %v866_v27 = vshrl.u32 %v803_v18, 16  ;;  %v844_v29 = vpack.i.b16 %v843_v15, %v842_v19  ;;  %v848_v30 = vpack.i.b16 %v836_v11, %v802_v17 }
 0x298   : > { %v860_v32 = vpack.i.b16 %v859_v16, %v858_v20  ;;  %v864_v33 = vpack.i.b16 %v837_v12, %v803_v18  ;;  %v870_v34 = vcombine.low %v840_v21, %v856_v24  ;;  %v723_v6 = vrot.slane %v716_v58, %v3022_v28 }
 0x299   : > { %v852_v37 = vpack.i.b16 %v851_v23, %v850_v26  ;;  %v868_v38 = vpack.i.b16 %v867_v25, %v866_v27  ;;  %v754_v9 = vshrl.u32 %v748_v2, 16  ;;  %v749_v18 = vcombine.high %v748_v2, %v2656_v39 }
 0x29a   : > { %v878_v42 = vcombine.low %v848_v30, %v864_v33  ;;  %v895_v43 = vcombine.low %v844_v29, %v860_v32  ;;  %v877_v47 = vrot.slane %v870_v34, %v3014_v22  ;;  %v752_v11 = vpack.i.b16 %v748_v2, %v723_v6 }
 0x29b   : > { %v903_v45 = vcombine.low %v852_v37, %v868_v38  ;;  %v753_v12 = vshrl.u32 %v723_v6, 16  ;;  %v724_v20 = vcombine.high %v723_v6, %v2656_v39  ;;  %v760_v21 = vshrl.u32 %v749_v18, 16 }
 0x29c   : > { %v885_v48 = vrot.slane %v878_v42, %v3014_v22  ;;  %v902_v49 = vrot.slane %v895_v43, %v3014_v22 }
 0x29d   : > { %v910_v35 = vrot.slane %v903_v45, %v3014_v22  ;;  %v755_v17 = vpack.i.b16 %v754_v9, %v753_v12  ;;  %v758_v23 = vpack.i.b16 %v749_v18, %v724_v20  ;;  %v759_v24 = vshrl.u32 %v724_v20, 16 }
 0x29e   : > { %v886_v50 = vcombine.low %v877_v47, %v885_v48 }
 0x29f   : > { %v911_v52 = vcombine.low %v902_v49, %v910_v35  ;;  %v761_v25 = vpack.i.b16 %v760_v21, %v759_v24  ;;  %v935_v35 = vpop.permute.xlu1 %934 }
 0x2a0   : > { %v893_v54 = vrot.slane %v886_v50, %v3022_v28  ;;  %v981_v57 = vrot.slane %v935_v35, %v3014_v22 }
 0x2a1   : > { %v918_v56 = vrot.slane %v911_v52, %v3022_v28 }
 0x2a2   : > { %v923_v60 = vshrl.u32 %v893_v54, 16  ;;  %v894_v4 = vcombine.high %v893_v54, %v2656_v39 }
 0x2a3   : > { %v922_v59 = vpack.i.b16 %v918_v56, %v893_v54  ;;  %v924_v61 = vshrl.u32 %v918_v56, 16  ;;  %v919_v62 = vcombine.high %v918_v56, %v2656_v39 }
 0x2a4   : > { %v929_v10 = vshrl.u32 %v894_v4, 16 }
 0x2a5   : > { %v1107_v63 = vsel %vm1102_vm2, %v922_v59, 0  ;;  %v925_v1 = vpack.i.b16 %v924_v61, %v923_v60  ;;  %v930_v7 = vshrl.u32 %v919_v62, 16  ;;  %v928_v8 = vpack.i.b16 %v919_v62, %v894_v4 }
 0x2a6   : > { %2178 = vmatpush3.bf16.xpose.msra.mxu1 %v1107_v63 }
 0x2a7   : > { %v1153_v5 = vsel %vm1102_vm2, %v925_v1, 0  ;;  %2189 = vmatprep.subr.bf16.mxu1 %v2647_v0  ;;  %v931_v15 = vpack.i.b16 %v930_v7, %v929_v10  ;;  %v1199_v16 = vsel %vm1102_vm2, %v928_v8, 0 }
 0x2a8   : > { %2184 = vmatpush3.bf16.xpose.msra.mxu0 %v1153_v5 }
 0x2a9   : > { %2195 = vmatprep.subr.bf16.mxu0 %v2647_v0  ;;  %v1245_v19 = vsel %vm1102_vm2, %v931_v15, 0 }
 0x2ad   : > { %2180 = vmatmul.mubr.msk.bf16.vlgmr.msra.gmra.mrb[0].mxu1 %vm1102_vm2, %v752_v11 }
 0x2ae   : > { %2190 = vmatpush3.bf16.xpose.msra.mxu1 %v1199_v16  ;;  %2191 = vmatprep.mubr.msk.bf16.mxu1 %vm2648_vm0, %v2647_v0 }
 0x2af   : > { %2186 = vmatmul.mubr.msk.bf16.vlgmr.msra.gmra.mrb[4].mxu0 %vm1102_vm2, %v755_v17  ;;  %2201 = vmatprep.subr.bf16.mxu1 %v2647_v0 }
 0x2b0   : > { %2196 = vmatpush3.bf16.xpose.msra.mxu0 %v1245_v19  ;;  %2197 = vmatprep.mubr.msk.bf16.mxu0 %vm2648_vm0, %v2647_v0 }
 0x2b1   : > { %2207 = vmatprep.subr.bf16.mxu0 %v2647_v0 }
 0x2b5   : > { %2192 = vmatmul.mubr.msk.bf16.vlgmr.msra.gmra.mrb[4].mxu1 %vm1102_vm2, %v758_v23 }
 0x2b6   : > { %2203 = vmatprep.mubr.msk.bf16.mxu1 %vm2648_vm0, %v2647_v0 }
 0x2b7   : > { %2198 = vmatmul.mubr.msk.bf16.vlgmr.msra.gmra.mrb[8].mxu0 %vm1102_vm2, %v761_v25 }
 0x2b8   : > { %2209 = vmatprep.mubr.msk.bf16.mxu0 %vm2648_vm0, %v2647_v0 }
 0x380   : > { %v1143_v26 = vpop.f32.mrb[0].mxu1 }
 0x381   : > { %v2181_v27 = vpop.f32.mrb[1].mxu1  ;;  %v1287_v29 = vsel %vm1102_vm2, %v1143_v26, -inf }
 0x382   : > { %1288 = vmax.xlane.f32.xlu1 %v1287_v29  ;;  %v1146_v30 = vpop.f32.mrb[2].mxu1  ;;  %v1189_v31 = vpop.f32.mrb[4].mxu0 }
 0x383   : > { %v2182_v32 = vpop.f32.mrb[3].mxu1  ;;  %v2187_v33 = vpop.f32.mrb[5].mxu0  ;;  %v1290_v34 = vsel %vm1102_vm2, %v1189_v31, -inf }
 0x384   : > { %1291 = vmax.xlane.f32.xlu0 %v1290_v34  ;;  %v1192_v37 = vpop.f32.mrb[6].mxu0 }
 0x385   : > { %v2188_v38 = vpop.f32.mrb[7].mxu0 }
 0x388   : > { %v3102_v40 = vpop.f32.mrb[4].mxu1 }
 0x389   : > { %v2193_v41 = vpop.f32.mrb[5].mxu1  ;;  %v1293_v48 = vsel %vm1102_vm2, %v3102_v40, -inf }
 0x38a   : > { %v1238_v42 = vpop.f32.mrb[6].mxu1  ;;  %v3104_v43 = vpop.f32.mrb[8].mxu0 }
 0x38b   : > { %v2194_v44 = vpop.f32.mrb[7].mxu1  ;;  %v2199_v45 = vpop.f32.mrb[9].mxu0  ;;  %v1296_v49 = vsel %vm1102_vm2, %v3104_v43, -inf }
 0x38c   : > { %v1284_v46 = vpop.f32.mrb[10].mxu0 }
 0x38d   : > { %v2200_v47 = vpop.f32.mrb[11].mxu0 }
 0x393   : > { %936 = vrot.lane.b32.xlu1 %v3008_v14, %s2653_s10  ;;  %v947_v14 = vrot.slane %v933_v36, %v3014_v22 }
 0x39a   : > { %938 = vrot.lane.b32.xlu0 %v3006_v13, %s2653_s10  ;;  %s3315_s10 = sld [smem:[#allocation22_spill]] }
 0x3b7   : > { %1294 = vmax.xlane.f32.xlu1 %v1293_v48 }
 0x3b9   : > { %1297 = vmax.xlane.f32.xlu0 %v1296_v49 }
 0x40f   : > { %v1289_v50 = vpop.xlane.xlu1 %1288 }
 0x410   : > { %v1299_v51 = vsub.f32 %v1143_v26, %v1289_v50 }
 0x411   : > { %v1292_v52 = vpop.xlane.xlu0 %1291 }
 0x412   : > { %v1303_v53 = vmul.f32 1.442695, %v1299_v51  ;;  %v1300_v54 = vsub.f32 %v1189_v31, %v1292_v52 }
 0x413   : > { %v937_v55 = vpop.permute.xlu1 %936 }
 0x414   : > { %2369 = vpow2.f32 %v1303_v53  ;;  %v1305_v13 = vmul.f32 1.442695, %v1300_v54  ;;  %v955_v56 = vrot.slane %v937_v55, %v3014_v22 }
 0x415   : > { %v939_v58 = vpop.permute.xlu0 %938 }
 0x416   : > { %2371 = vpow2.f32 %v1305_v13  ;;  %v956_v59 = vcombine.low %v947_v14, %v955_v56  ;;  %v957_v60 = vcombine.high %v947_v14, %v955_v56  ;;  %v989_v61 = vrot.slane %v939_v58, %v3014_v22 }
 0x418   : > { %v964_v62 = vrot.slane %v956_v59, %v3022_v28  ;;  %v971_v63 = vrot.slane %v957_v60, %v3022_v28  ;;  %v990_v1 = vcombine.low %v981_v57, %v989_v61  ;;  %v991_v2 = vcombine.high %v981_v57, %v989_v61 }
 0x41a   : > { %v972_v4 = vcombine.high %v964_v62, %v2656_v39  ;;  %v973_v5 = vcombine.high %v971_v63, %v2656_v39  ;;  %v998_v6 = vrot.slane %v990_v1, %v3022_v28  ;;  %v1005_v7 = vrot.slane %v991_v2, %v3022_v28 }
 0x41b   : > { %v1012_v8 = vshrl.u32 %v964_v62, 16  ;;  %v1028_v9 = vshrl.u32 %v971_v63, 16 }
 0x41c   : > { %v1006_v10 = vcombine.high %v998_v6, %v2656_v39  ;;  %v1007_v11 = vcombine.high %v1005_v7, %v2656_v39  ;;  %v1010_v12 = vpack.i.b16 %v998_v6, %v964_v62  ;;  %v1013_v15 = vshrl.u32 %v998_v6, 16 }
 0x41d   : > { %v1020_v17 = vshrl.u32 %v972_v4, 16  ;;  %v1036_v18 = vshrl.u32 %v973_v5, 16  ;;  %v1026_v19 = vpack.i.b16 %v1005_v7, %v971_v63  ;;  %v1029_v20 = vshrl.u32 %v1005_v7, 16 }
 0x41e   : > { %v2370_v16 = vpop.eup %2369  ;;  %v1014_v21 = vpack.i.b16 %v1013_v15, %v1012_v8  ;;  %v1018_v23 = vpack.i.b16 %v1006_v10, %v972_v4  ;;  %v1021_v24 = vshrl.u32 %v1006_v10, 16  ;;  %v1034_v25 = vpack.i.b16 %v1007_v11, %v973_v5 }
 0x41f   : > { %v1030_v27 = vpack.i.b16 %v1029_v20, %v1028_v9  ;;  %v1037_v29 = vshrl.u32 %v1007_v11, 16  ;;  %v1040_v30 = vcombine.low %v1010_v12, %v1026_v19  ;;  %v1311_v31 = vsel %vm1102_vm2, %v2370_v16, 0.0 }
 0x420   : > { %v2372_v26 = vpop.eup %2371  ;;  %v1022_v32 = vpack.i.b16 %v1021_v24, %v1020_v17  ;;  %v1048_v33 = vcombine.low %v1018_v23, %v1034_v25  ;;  %1312 = vadd.xlane.f32.xlu0 %v1311_v31  ;;  %v1323_v58 = vpack.c.bf16 %v2370_v16, %v2370_v16 }
 0x421   : > { %v1314_v34 = vsel %vm1102_vm2, %v2372_v26, 0.0  ;;  %v1038_v37 = vpack.i.b16 %v1037_v29, %v1036_v18  ;;  %v1065_v38 = vcombine.low %v1014_v21, %v1030_v27  ;;  %v1047_v41 = vrot.slane %v1040_v30, %v3014_v22 }
 0x422   : > { %1315 = vadd.xlane.f32.xlu1 %v1314_v34  ;;  %v1055_v42 = vrot.slane %v1048_v33, %v3014_v22  ;;  %v1324_v61 = vpack.c.bf16 %v2372_v26, %v2372_v26 }
 0x423   : > { %v1073_v44 = vcombine.low %v1022_v32, %v1038_v37  ;;  %v1072_v46 = vrot.slane %v1065_v38, %v3014_v22 }
 0x424   : > { %v1056_v45 = vcombine.low %v1047_v41, %v1055_v42 }
 0x425   : > { %v1080_v47 = vrot.slane %v1073_v44, %v3014_v22 }
 0x426   : > { %v1063_v48 = vrot.slane %v1056_v45, %v3022_v28 }
 0x427   : > { %v1081_v49 = vcombine.low %v1072_v46, %v1080_v47 }
 0x428   : > { %v1064_v35 = vcombine.high %v1063_v48, %v2656_v39  ;;  %v1093_v51 = vshrl.u32 %v1063_v48, 16 }
 0x429   : > { %v1088_v36 = vrot.slane %v1081_v49, %v3022_v28 }
 0x42a   : > { %v1099_v54 = vshrl.u32 %v1064_v35, 16 }
 0x42b   : > { %v1092_v50 = vpack.i.b16 %v1088_v36, %v1063_v48  ;;  %v1094_v52 = vshrl.u32 %v1088_v36, 16  ;;  %v1089_v53 = vcombine.high %v1088_v36, %v2656_v39 }
 0x42d   : > { %v1332_v55 = vsel %vm1330_vm3, %v1092_v50, 0  ;;  %v1095_v14 = vpack.i.b16 %v1094_v52, %v1093_v51  ;;  %v1098_v13 = vpack.i.b16 %v1089_v53, %v1064_v35  ;;  %v1100_v56 = vshrl.u32 %v1089_v53, 16 }
 0x42e   : > { %2202 = vmatpush3.bf16.msra.mxu1 %v1332_v55 }
 0x42f   : > { %v1378_v57 = vsel %vm1330_vm3, %v1095_v14, 0  ;;  %2213 = vmatprep.subr.bf16.mxu1 %v2647_v0  ;;  %v1101_v59 = vpack.i.b16 %v1100_v56, %v1099_v54  ;;  %v1424_v60 = vsel %vm1330_vm3, %v1098_v13, 0 }
 0x430   : > { %2208 = vmatpush3.bf16.msra.mxu0 %v1378_v57 }
 0x431   : > { %2204 = vmatmul.mubr.msk.bf16.vlgmr.msra.gmra.mrb[8].mxu1 %vm1102_vm2, %v1323_v58  ;;  %2219 = vmatprep.subr.bf16.mxu0 %v2647_v0  ;;  %v1470_v62 = vsel %vm1330_vm3, %v1101_v59, 0 }
 0x432   : > { %2214 = vmatpush3.bf16.msra.mxu1 %v1424_v60  ;;  %2215 = vmatprep.mubr.msk.bf16.mxu1 %vm2648_vm0, %v2647_v0 }
 0x433   : > { %2210 = vmatmul.mubr.msk.bf16.vlgmr.msra.gmra.mrb[12].mxu0 %vm1102_vm2, %v1324_v61  ;;  %2225 = vmatprep.subr.bf16.mxu1 %v2647_v0 }
 0x434   : > { %2220 = vmatpush3.bf16.msra.mxu0 %v1470_v62  ;;  %2221 = vmatprep.mubr.msk.bf16.mxu0 %vm2648_vm0, %v2647_v0 }
 0x435   : > { %2233 = vmatprep.subr.bf16.mxu0 %v2647_v0 }
 0x444   : > { %v1295_v63 = vpop.xlane.xlu1 %1294 }
 0x445   : > { %v1301_v1 = vsub.f32 %v3102_v40, %v1295_v63  ;;  %v2363_v40 = vld [vmem:[#allocation7] sm:$0xff]  }
 0x446   : > { %v1298_v2 = vpop.xlane.xlu0 %1297 }
 0x447   : > { %v1307_v4 = vmul.f32 1.442695, %v1301_v1  ;;  %v1302_v5 = vsub.f32 %v3104_v43, %v1298_v2 }
 0x449   : > { %2373 = vpow2.f32 %v1307_v4  ;;  %v1309_v6 = vmul.f32 1.442695, %v1302_v5 }
 0x44b   : > { %2375 = vpow2.f32 %v1309_v6 }
 0x453   : > { %v2374_v7 = vpop.eup %2373 }
 0x454   : > { %v1317_v8 = vsel %vm1102_vm2, %v2374_v7, 0.0  ;;  %v1325_v9 = vpack.c.bf16 %v2374_v7, %v2374_v7 }
 0x455   : > { %v2376_v10 = vpop.eup %2375  ;;  %1318 = vadd.xlane.f32.xlu0 %v1317_v8 }
 0x456   : > { %2216 = vmatmul.mubr.msk.bf16.vlgmr.msra.gmra.mrb[12].mxu1 %vm1102_vm2, %v1325_v9  ;;  %v1320_v11 = vsel %vm1102_vm2, %v2376_v10, 0.0  ;;  %v1326_v12 = vpack.c.bf16 %v2376_v10, %v2376_v10 }
 0x457   : > { %1321 = vadd.xlane.f32.xlu1 %v1320_v11  ;;  %2229 = vmatprep.mubr.msk.bf16.mxu1 %vm2648_vm0, %v2647_v0 }
 0x458   : > { %2222 = vmatmul.mubr.msk.bf16.vlgmr.msra.gmra.mrb[16].mxu0 %vm1102_vm2, %v1326_v12  ;;  %2226 = vmatpush3.bf16.msra.mxu1 %v2363_v40 }
 0x459   : > { %2237 = vmatprep.mubr.msk.bf16.mxu0 %vm2648_vm0, %v2647_v0  ;;  %2227 = vmatprep.subr.bf16.mxu1 %v2647_v0 }
 0x4ad   : > { %v1313_v23 = vpop.xlane.xlu0 %1312 }
 0x4ae   : > { %2377 = vrcp.f32 %v1313_v23 }
 0x4af   : > { %v1316_v24 = vpop.xlane.xlu1 %1315 }
 0x4b0   : > { %2379 = vrcp.f32 %v1316_v24 }
 0x4b8   : > { %v2378_v27 = vpop.eup %2377 }
 0x4ba   : > { %v2380_v30 = vpop.eup %2379 }
 0x4e2   : > { %v1319_v25 = vpop.xlane.xlu0 %1318 }
 0x4e3   : > { %2381 = vrcp.f32 %v1319_v25  ;;  %v2364_v25 = vld [vmem:[#allocation7 + $0x8] sm:$0xff]  }
 0x4e4   : > { %v1322_v26 = vpop.xlane.xlu1 %1321  ;;  %2228 = vmatpush3.bf16.msra.mxu1 %v2364_v25 }
 0x4e5   : > { %2383 = vrcp.f32 %v1322_v26  ;;  %2241 = vmatprep.subr.bf16.mxu1 %v2647_v0 }
 0x4ed   : > { %v2382_v32 = vpop.eup %2381 }
 0x4ef   : > { %v2384_v41 = vpop.eup %2383 }
 0x504   : > { %v1368_v43 = vpop.f32.mrb[8].mxu1 }
 0x505   : > { %v2205_v15 = vpop.f32.mrb[9].mxu1  ;;  %v1516_v29 = vmul.f32 %v2378_v27, %v1368_v43 }
 0x506   : > { %v1371_v16 = vpop.f32.mrb[10].mxu1  ;;  %v1414_v17 = vpop.f32.mrb[12].mxu0 }
 0x507   : > { %v2206_v18 = vpop.f32.mrb[11].mxu1  ;;  %v2211_v19 = vpop.f32.mrb[13].mxu0  ;;  %v1517_v31 = vmul.f32 %v2380_v30, %v1414_v17  ;;  %v1520_v34 = vpack.c.bf16 %v1516_v29, %v1516_v29 }
 0x508   : > { %v1417_v20 = vpop.f32.mrb[14].mxu0 }
 0x509   : > { %v2212_v21 = vpop.f32.mrb[15].mxu0  ;;  %v1554_v45 = vpack.c.bf16 %v1517_v31, %v1517_v31  ;;  %v1527_v36 = vrot.slane %v1520_v34, %v3014_v22 }
 0x50b   : > { %v1561_v53 = vrot.slane %v1554_v45, %v3014_v22 }
 0x529   : > { %v1460_v33 = vpop.f32.mrb[12].mxu1 }
 0x52a   : > { %v1518_v37 = vmul.f32 %v2382_v32, %v1460_v33  ;;  %v2217_v38 = vpop.f32.mrb[13].mxu1 }
 0x52b   : > { %v1463_v42 = vpop.f32.mrb[14].mxu1  ;;  %v1506_v44 = vpop.f32.mrb[16].mxu0 }
 0x52c   : > { %v1528_v46 = vpack.c.bf16 %v1518_v37, %v1518_v37  ;;  %v1519_v47 = vmul.f32 %v2384_v41, %v1506_v44  ;;  %v2218_v48 = vpop.f32.mrb[15].mxu1  ;;  %v2223_v49 = vpop.f32.mrb[17].mxu0 }
 0x52d   : > { %v1509_v35 = vpop.f32.mrb[18].mxu0 }
 0x52e   : > { %v1535_v50 = vrot.slane %v1528_v46, %v3014_v22  ;;  %v1562_v51 = vpack.c.bf16 %v1519_v47, %v1519_v47  ;;  %v2224_v52 = vpop.f32.mrb[19].mxu0 }
 0x530   : > { %v1536_v54 = vcombine.low %v1527_v36, %v1535_v50  ;;  %v1537_v55 = vcombine.high %v1527_v36, %v1535_v50  ;;  %v1569_v14 = vrot.slane %v1562_v51, %v3014_v22  ;;  %v2121_v50 = vld [vmem:[%s3274_s4] ss:$0 sm:$0xff] }
 0x532   : > { %v1544_v13 = vrot.slane %v1536_v54, %v3022_v28  ;;  %v1551_v56 = vrot.slane %v1537_v55, %v3022_v28  ;;  %v1570_v57 = vcombine.low %v1561_v53, %v1569_v14  ;;  %v1571_v58 = vcombine.high %v1561_v53, %v1569_v14 }
 0x534   : > { %v1552_v59 = vcombine.high %v1544_v13, %v2656_v39  ;;  %v1578_v60 = vrot.slane %v1570_v57, %v3022_v28  ;;  %v1585_v61 = vrot.slane %v1571_v58, %v3022_v28  ;;  %v1553_v62 = vcombine.high %v1551_v56, %v2656_v39 }
 0x535   : > { %v1592_v63 = vshrl.u32 %v1544_v13, 16  ;;  %v1608_v7 = vshrl.u32 %v1551_v56, 16 }
 0x536   : > { %v1586_v1 = vcombine.high %v1578_v60, %v2656_v39  ;;  %v1587_v2 = vcombine.high %v1585_v61, %v2656_v39  ;;  %v1590_v4 = vpack.i.b16 %v1578_v60, %v1544_v13  ;;  %v1593_v5 = vshrl.u32 %v1578_v60, 16 }
 0x537   : > { %v1600_v6 = vshrl.u32 %v1552_v59, 16  ;;  %v1606_v8 = vpack.i.b16 %v1585_v61, %v1551_v56  ;;  %v1609_v9 = vshrl.u32 %v1585_v61, 16  ;;  %v1616_v43 = vshrl.u32 %v1553_v62, 16  ;;  %v2365_v61 = vld [vmem:[%s3277_s7] sm:$0xff]  }
 0x538   : > { %v1594_v10 = vpack.i.b16 %v1593_v5, %v1592_v63  ;;  %v1598_v11 = vpack.i.b16 %v1586_v1, %v1552_v59  ;;  %v1601_v12 = vshrl.u32 %v1586_v1, 16  ;;  %v1614_v40 = vpack.i.b16 %v1587_v2, %v1553_v62  ;;  %2234 = vmatpush3.bf16.msra.mxu0 %v2365_v61 }
 0x539   : > { %v1610_v15 = vpack.i.b16 %v1609_v9, %v1608_v7  ;;  %v1617_v16 = vshrl.u32 %v1587_v2, 16  ;;  %v1620_v17 = vcombine.low %v1590_v4, %v1606_v8  ;;  %2235 = vmatprep.subr.bf16.mxu0 %v2647_v0  ;;  %v2125_v4 = vld [vmem:[#allocation8] ss:$0 sm:$0xff] }
 0x53a   : > { %v1602_v18 = vpack.i.b16 %v1601_v12, %v1600_v6  ;;  %v1628_v19 = vcombine.low %v1598_v11, %v1614_v40  ;;  %v2126_v6 = vld [vmem:[#allocation10] ss:$0 sm:$0xff]  ;;  %v2368_v11 = vld [vmem:[%s3315_s10 + $0x8] sm:$0xff]   ;;  %v2127_v12 = vld [vmem:[#allocation11] ss:$0 sm:$0xff] }
 0x53b   : > { %v1618_v20 = vpack.i.b16 %v1617_v16, %v1616_v43  ;;  %v1645_v21 = vcombine.low %v1594_v10, %v1610_v15  ;;  %v1627_v23 = vrot.slane %v1620_v17, %v3014_v22  ;;  %v2367_v10 = vld [vmem:[%s3315_s10] sm:$0xff]  }
 0x53c   : > { %v1635_v24 = vrot.slane %v1628_v19, %v3014_v22 }
 0x53d   : > { %v1653_v26 = vcombine.low %v1602_v18, %v1618_v20  ;;  %v1652_v29 = vrot.slane %v1645_v21, %v3014_v22  ;;  %v2131_v20 = vld [vmem:[%s3316_s30] ss:$0 sm:$0xff] }
 0x53e   : > { %v1636_v27 = vcombine.low %v1627_v23, %v1635_v24 }
 0x53f   : > { %v1660_v30 = vrot.slane %v1653_v26, %v3014_v22 }
 0x540   : > { %v1643_v31 = vrot.slane %v1636_v27, %v3022_v28 }
 0x541   : > { %v1661_v32 = vcombine.low %v1652_v29, %v1660_v30 }
 0x542   : > { %v1644_v34 = vcombine.high %v1643_v31, %v2656_v39  ;;  %v1673_v37 = vshrl.u32 %v1643_v31, 16 }
 0x543   : > { %v1668_v33 = vrot.slane %v1661_v32, %v3022_v28 }
 0x544   : > { %v1679_v46 = vshrl.u32 %v1644_v34, 16 }
 0x545   : > { %v1674_v38 = vshrl.u32 %v1668_v33, 16  ;;  %v1669_v41 = vcombine.high %v1668_v33, %v2656_v39  ;;  %v1672_v42 = vpack.i.b16 %v1668_v33, %v1643_v31 }
 0x547   : > { %v1675_v44 = vpack.i.b16 %v1674_v38, %v1673_v37  ;;  %v1678_v45 = vpack.i.b16 %v1669_v41, %v1644_v34  ;;  %v1680_v47 = vshrl.u32 %v1669_v41, 16 }
 0x549   : > { %1682 = vrot.lane.b32.xlu0 %v1675_v44, %s2657_s12  ;;  %1684 = vrot.lane.b32.xlu1 %v1678_v45, %s2658_s13  ;;  %v1681_v22 = vpack.i.b16 %v1680_v47, %v1679_v46  ;;  %v2136_v45 = vld [vmem:[%s3318_s16] ss:$0 sm:$0xff]  ;;  %s2138_s12 = sshll.u32 %s2752_s14, 7  ;;  %s522_s13 = scalar_lea.vmem [#allocation13], %s2102_s19 }
 0x54a   : > { %s3225_s2 = scalar_lea.hbm %s3319_s0, %s2138_s12  ;;  %s2660_s14 = smov [#allocation13]  }
 0x54b   : > { %s2563_s19 = sshll.u32 %s2660_s14, 4  ;;  %s2564_s19 = int_to_ptr.vmem [resolvable:$false] %s2563_s19 }
 0x54d   : > { %1686 = vrot.lane.b32.xlu1 %v1681_v22, %s2659_s29  ;;  %s1973_s29 = sshll.u32 %s522_s13, 4  ;;  %s3227_s29 = int_to_ptr.vmem [resolvable:$true] %s1973_s29 }
 0x54e   : > { %s2559_s1 = scalar_lea.vmem %s3227_s29, 128  ;;  %p2566_p1 = scmp.lt.s32.totalorder %s3227_s29, %s2564_s19 }
 0x54f   : > { %p2560_p7 = scmp.ne.s32.totalorder %s3227_s29, %s2559_s1 }
 0x551   : > { %p2561_p12 = pnand %p2560_p7, %p3320_p4 }
 0x553   : > { %p2562_p13 = pneg %p2561_p12 }
 0x5bb   : > { %v1683_v48 = vpop.permute.xlu0 %1682  ;;  %v1685_v28 = vpop.permute.xlu1 %1684 }
 0x5bc   : > { %v1690_v49 = vsel %vm1102_vm2, %v1672_v42, %v1683_v48  ;;  %v2135_v42 = vld [vmem:[%s3317_s17] ss:$0 sm:$0xff]  ;;  %s2565_s17 = scalar_lea.vmem %s2564_s19, 256 }
 0x5bd   : > { %v1693_v35 = vsel %vm1691_vm4, %v1690_v49, %v1685_v28  ;;  %p2567_p3 = scmp.lt.s32.totalorder %s2565_s17, %s2559_s1 }
 0x5bf   : > { %v1687_v39 = vpop.permute.xlu1 %1686  ;;  %p2568_p2 = por %p2567_p3, %p2566_p1 }
 0x5c0   : > { %v1696_v36 = vsel %vm1694_vm5, %v1693_v35, %v1687_v39 }
 0x5c1   : > { %2230 = vmatmul.mubr.msk.bf16.vlgmr.msra.gmra.mrb[16].mxu1 %vm549_vm1, %v1696_v36  ;;  %p2569_p0 = pnand %p2568_p2, %p2562_p13 }
 0x5c2   : > { %2245 = vmatprep.mubr.msk.bf16.mxu1 %vm2648_vm0, %v2647_v0  ;;  %2242 = vmatpush3.bf16.msra.mxu1 %v2367_v10 }
 0x5c3   : > { %2243 = vmatprep.subr.bf16.mxu1 %v2647_v0 }
 0x5c6   : > { %2244 = vmatpush3.bf16.msra.mxu1 %v2368_v11 }
 0x694   : > { %v1756_v51 = vpop.f32.mrb[16].mxu1 }
 0x695   : > { %v1757_v52 = vadd.f32 %v2121_v50, %v1756_v51  ;;  %v2231_v53 = vpop.f32.mrb[17].mxu1 }
 0x696   : > { %v1759_v54 = vpop.f32.mrb[18].mxu1 }
 0x697   : > { %v2232_v55 = vpop.f32.mrb[19].mxu1  ;;  %v1762_v14 = vadd.f32 %v1757_v52, %v2994_v3  ;;  %v2366_v3 = vld [vmem:[%s3277_s7 + $0x8] sm:$0xff]  }
 0x698   : > { %2236 = vmatpush3.bf16.msra.mxu0 %v2366_v3 }
 0x699   : > { %v1763_v13 = vsel %vm549_vm1, %v1762_v14, 0.0 }
 0x69a   : > { %1764 = vadd.xlane.f32.xlu0 %v1763_v13 }
 0x727   : > { %v1765_v56 = vpop.xlane.xlu0 %1764 }
 0x728   : > { %v1767_v57 = vmul.f32 0.03125, %v1765_v56 }
 0x72a   : > { %v1768_v58 = vsub.f32 %v1762_v14, %v1767_v57 }
 0x72c   : > { %v1769_v59 = vmul.f32 %v1768_v58, %v1768_v58 }
 0x72e   : > { %v1770_v60 = vsel %vm549_vm1, %v1769_v59, 0.0 }
 0x72f   : > { %1771 = vadd.xlane.f32.xlu1 %v1770_v60 }
 0x7bc   : > { %v1772_v62 = vpop.xlane.xlu1 %1771 }
 0x7bd   : > { %v1773_v63 = vmul.f32 0.03125, %v1772_v62 }
 0x7bf   : > { %v1774_v1 = vadd.f32 1e-05, %v1773_v63 }
 0x7c1   : > { %2385 = vrsqrt.f32 %v1774_v1 }
 0x7cb   : > { %v2386_v2 = vpop.eup %2385 }
 0x7cc   : > { %v1776_v5 = vmul.f32 %v2386_v2, %v1768_v58 }
 0x7ce   : > { %v1784_v7 = vmul.f32 %v2125_v4, %v1776_v5 }
 0x7d0   : > { %v1792_v8 = vadd.f32 %v2126_v6, %v1784_v7 }
 0x7d2   : > { %v1793_v9 = vpack.c.bf16 %v1792_v8, %v1792_v8 }
 0x7d4   : > { %2238 = vmatmul.mubr.msk.bf16.vlgmr.msra.gmra.mrb[20].mxu0 %vm549_vm1, %v1793_v9 }
 0x8a7   : > { %v1854_v40 = vpop.f32.mrb[20].mxu0 }
 0x8a8   : > { %v1855_v43 = vadd.f32 %v2127_v12, %v1854_v40  ;;  %v2239_v15 = vpop.f32.mrb[21].mxu0 }
 0x8a9   : > { %v1857_v16 = vpop.f32.mrb[22].mxu0 }
 0x8aa   : > { %v1860_v17 = vmax.f32 %v1855_v43, 0.0  ;;  %v2240_v18 = vpop.f32.mrb[23].mxu0 }
 0x8ac   : > { %v1861_v19 = vpack.c.bf16 %v1860_v17, %v1860_v17 }
 0x8ae   : > { %2246 = vmatmul.mubr.msk.bf16.vlgmr.msra.gmra.mrb[20].mxu1 %vm549_vm1, %v1861_v19 }
 0x981   : > { %v1922_v0 = vpop.f32.mrb[20].mxu1 }
 0x982   : > { %v1923_v21 = vadd.f32 %v2131_v20, %v1922_v0  ;;  %v2247_v23 = vpop.f32.mrb[21].mxu1 }
 0x983   : > { %v1925_v24 = vpop.f32.mrb[22].mxu1 }
 0x984   : > { %v2248_v25 = vpop.f32.mrb[23].mxu1  ;;  %v1928_v26 = vadd.f32 %v1923_v21, %v1792_v8 }
 0x986   : > { %v1929_v27 = vsel %vm549_vm1, %v1928_v26, 0.0 }
 0x987   : > { %1930 = vadd.xlane.f32.xlu0 %v1929_v27 }
 0xa14   : > { %v1931_v29 = vpop.xlane.xlu0 %1930 }
 0xa15   : > { %v1932_v30 = vmul.f32 0.03125, %v1931_v29 }
 0xa17   : > { %v1933_v31 = vsub.f32 %v1928_v26, %v1932_v30 }
 0xa19   : > { %v1934_v32 = vmul.f32 %v1933_v31, %v1933_v31 }
 0xa1b   : > { %v1935_v33 = vsel %vm549_vm1, %v1934_v32, 0.0 }
 0xa1c   : > { %1936 = vadd.xlane.f32.xlu0 %v1935_v33 }
 0xaa9   : > { %v1937_v34 = vpop.xlane.xlu0 %1936 }
 0xaaa   : > { %v1938_v37 = vmul.f32 0.03125, %v1937_v34 }
 0xaac   : > { %v1939_v38 = vadd.f32 1e-05, %v1938_v37 }
 0xaae   : > { %2387 = vrsqrt.f32 %v1939_v38 }
 0xab8   : > { %v2388_v41 = vpop.eup %2387 }
 0xab9   : > { %v1941_v44 = vmul.f32 %v2388_v41, %v1933_v31 }
 0xabb   : > { %v1949_v46 = vmul.f32 %v2135_v42, %v1941_v44 }
 0xabd   : > { %v1957_v47 = vadd.f32 %v2136_v45, %v1949_v46 }
 0xabf   : > { %1958 = vst.msk [vmem:[%s522_s13] sm:$0xff] %vm549_vm1, %v1957_v47 }
 0xac0   : > { %2572 = shalt.err (!%p2569_p0)
}
 0xac1   : > { %s2573_s22 = scalar_lea.hbm %s3225_s2, 128  ;;  %s2577_s16 = scalar_lea.hbm %s3319_s0, 256 }
 0xac2   : > { %p2574_p6 = scmp.ne.s32.totalorder %s3225_s2, %s2573_s22  ;;  %p2578_p8 = scmp.lt.u32.totalorder %s3225_s2, %s3319_s0 }
 0xac3   : > { %p2579_p5 = scmp.lt.u32.totalorder %s2577_s16, %s2573_s22  ;;  %p2581_p7 = scmp.lt.u32.totalorder %s2573_s22, %s3225_s2 }
 0xac4   : > { %p2575_p10 = pnand %p2574_p6, %p3320_p4 }
 0xac5   : > { %p2580_p9 = por %p2579_p5, %p2578_p8 }
 0xac6   : > { %p2576_p11 = pneg %p2575_p10 }
 0xac7   : > { %p2582_p12 = por %p2581_p7, %p2580_p9 }
 0xac9   : > { %p2583_p13 = pnand %p2582_p12, %p2576_p11 }
 0xacb   : > { %2586 = shalt.err (!%p2583_p13)
}
 0xacc   : > { %2271 = dma.vmem_to_hbm [thread:$0]  (%p3320_p4), %s3227_s29, 128, %s3225_s2, %s1960_s15  }
 0xacd PF: > { %s1985_s21 = sand.u32 1, %s2625_s25   ;;  %p3321_p1 = scmp.ne.s32.totalorder %s3304_s23, 0 }
 0xace   : > { %p3322_p3 = scmp.ge.s32.totalorder %s2637_s28, 2  ;;  %s1986_s30 = scalar_lea.sflag [#allocation4], %s1985_s21 }
 0xad0   : > { %p2294_p2 = pnand %p3322_p3, %p3321_p1 }
 0xad2   : > { %2620 = dma.done.wait (!%p2294_p2), %s1986_s30, 128  }
 0xad3   : > { %2622 = vsyncadd (!%p2294_p2), %s1986_s30, 4294967168  ;;  %p29_p0 = scmp.ge.s32.totalorder %s2896_s18, 4   ;;  %s3323_s25 = smov %s2629_s26 }
 0xad4   : > { %s3324_s26 = smov %s2633_s27  ;;  %s3325_s27 = smov %s2908_s9 }
 0xad5   : > { %s3326_s28 = smov %s2896_s18  ;;  %31 = sbr.rel (!%p29_p0) target bundleno = 17 (0x11), region = 137 }
 0xadc   :  { %1991 = vsyncpa [#allocation3], 1 }
 0xadd   :  { %1993 = vsyncpa [#allocation3 + $0x1], 1 }
 0xade   :  { %1994 = vsyncpa [#allocation6], 1 }
 0xadf   :  { %1995 = vsyncpa [#allocation9], 1 }
 0xae0   :  { %1996 = vsyncpa [#allocation12], 1 }
 0xae1   :  { %1997 = vsyncpa [#allocation4], 1 }
 0xae2   :  { %1999 = vsyncpa [#allocation4 + $0x1], 1 }

</bundles_post_ra>
